<compile_context>
chip_gen: v7x
topology: tpu7x:2x2x1
jax: 0.10.0
libtpu: 0.0.40
codegen_flags: <defaults>
</compile_context>

<pallas_src>
import jax
import jax.numpy as jnp
from jax import lax
from jax.experimental import pallas as pl
from jax.experimental.pallas import tpu as pltpu


# ---------------------------------------------------------------------------
# Model hyper-parameters (small, consistent with the module's __init__)
# ---------------------------------------------------------------------------
VOCAB_SIZE = 50
EMBED_DIM = 32
HIDDEN_DIM = 32
NUM_LAYERS = 2
OUTPUT_DIM = 4
DROPOUT = 0.1          # identity at inference
BATCH = 2
SEQ_LEN = 8

B_PAD = 8                                   # sublane-pad batch to f32 min tile
LANES = 128                                 # lane-dense FC output width (== 4H here)
VOCAB_PAD = ((VOCAB_SIZE + 7) // 8) * 8     # 56 (tile-friendly table rows)


# ---------------------------------------------------------------------------
# Pallas kernel: in-kernel gather + fused 2-layer LSTM recurrence + FC head
# ---------------------------------------------------------------------------
def lstm_fwd_kernel(ids_ref,    # SMEM (B*T,) int32        token ids, row-major (b, t)
                    embp_ref,   # VMEM (VOCAB_PAD, 4H) f32  embedding @ W_ih0^T + b0
                    wbig_ref,   # VMEM (2H, 8H)        f32  [[Whh0^T, Wih1^T],[0, Whh1^T]]
                    head_ref,   # VMEM (40, 128)       f32  rows 0:H=W_fc^T, H=b_fc, H+1=b1
                    out_ref,    # VMEM (Bp, 128)       f32  lane-dense logits tile
                    xg_ref):    # VMEM scratch (T*Bp, 4H) f32
    Bp = out_ref.shape[0]
    H = wbig_ref.shape[0] // 2
    T = xg_ref.shape[0] // Bp
    B = ids_ref.shape[0] // T

    # ---- in-kernel embedding gather (pre-projected rows, b0 already folded) ----
    xg_ref[...] = jnp.zeros_like(xg_ref)            # defined values in pad rows
    for t in range(T):
        for b in range(B):
            tok = ids_ref[b * T + t]                # scalar read from SMEM
            xg_ref[pl.ds(t * Bp + b, 1), :] = embp_ref[pl.ds(tok, 1), :]

    # ---- loop-invariant operands (hoisted out of the recurrence) ---------------
    wbig = wbig_ref[...]                                            # (2H, 8H)
    wfc = head_ref[0:H, :]                                          # (H, 128)
    bfc = head_ref[H:H + 1, :]                                      # (1, 128)
    b1 = jnp.broadcast_to(head_ref[H + 1:H + 2, :], (Bp, 4 * H))    # broadcast ONCE

    def gate_math(gates, c_prev):
        # PyTorch gate order: i, f, g, o.  Full-vreg EUP ops; tanh-form sigmoid
        # avoids exp + f32 divide on the dependent chain.
        sig = 0.5 * jnp.tanh(0.5 * gates) + 0.5
        tnh = jnp.tanh(gates)
        i_g = sig[:, 0 * H:1 * H]
        f_g = sig[:, 1 * H:2 * H]
        g_g = tnh[:, 2 * H:3 * H]
        o_g = sig[:, 3 * H:4 * H]
        c_new = f_g * c_prev + i_g * g_g
        h_new = o_g * jnp.tanh(c_new)
        return h_new, c_new

    zeros_h = jnp.zeros((Bp, H), jnp.float32)

    # layer 0, step 0: h0(-1) = 0 so gates are just the gathered projection rows
    h0, c0 = gate_math(xg_ref[0:Bp, :], zeros_h)
    h1, c1 = zeros_h, zeros_h

    # ---- fused recurrence: ONE (Bp,2H)x(2H,8H) matmul per step ------------------
    #   m[:, 4H:] + b1       -> gates1(t)       (layer 1, this step)
    #   m[:, :4H] + xg(t+1)  -> gates0(t+1)     (layer 0, next step)
    for t in range(T):
        z = jnp.concatenate([h0, h1], axis=1)                       # (Bp, 2H)
        m = jnp.dot(z, wbig, preferred_element_type=jnp.float32)    # (Bp, 8H)
        h1, c1 = gate_math(m[:, 4 * H:8 * H] + b1, c1)
        if t + 1 < T:
            gates0 = xg_ref[(t + 1) * Bp:(t + 2) * Bp, :] + m[:, 0:4 * H]
            h0, c0 = gate_math(gates0, c0)

    # ---- lane-dense FC head on the last layer-1 hidden state --------------------
    logits = jnp.dot(h1, wfc, preferred_element_type=jnp.float32) + bfc
    out_ref[...] = logits.astype(out_ref.dtype)


# ---------------------------------------------------------------------------
# One-time weight packing (keep ALL preprocessing out of the per-call path)
# ---------------------------------------------------------------------------
def prepare_params(params):
    H, O, V = HIDDEN_DIM, OUTPUT_DIM, VOCAB_SIZE
    assert 4 * H == LANES, "head packing below assumes 4H == 128 lanes"

    # Fold embedding lookup through layer-0 input projection (+ layer-0 biases).
    emb_proj = (params["embedding"].astype(jnp.float32) @ params["w_ih_l0"].T
                + params["b_ih_l0"] + params["b_hh_l0"])                 # (V, 4H)
    emb_proj = jnp.zeros((VOCAB_PAD, 4 * H), jnp.float32).at[:V, :].set(emb_proj)

    # Fused per-step block-matmul weight (gate order i, f, g, o preserved).
    w_big = jnp.zeros((2 * H, 8 * H), jnp.float32)
    w_big = w_big.at[:H, :4 * H].set(params["w_hh_l0"].T)
    w_big = w_big.at[:H, 4 * H:].set(params["w_ih_l1"].T)
    w_big = w_big.at[H:, 4 * H:].set(params["w_hh_l1"].T)

    # FC head + remaining biases packed into one lane-dense VMEM slab.
    head = jnp.zeros((40, LANES), jnp.float32)
    head = head.at[:H, :O].set(params["w_fc"].T)                      # rows 0:H
    head = head.at[H, :O].set(params["b_fc"])                         # row H
    head = head.at[H + 1, :].set(params["b_ih_l1"] + params["b_hh_l1"])  # row H+1
    return {"emb_proj": emb_proj, "w_big": w_big, "head": head}


# ---------------------------------------------------------------------------
# Forward wrapper: one pallas_call, no per-call HLO glue
# ---------------------------------------------------------------------------
@jax.jit
def lstm_classifier_forward(prepared, input_ids):
    B, T = input_ids.shape
    ids_flat = input_ids.reshape(-1).astype(jnp.int32)       # (B*T,), row-major

    out = pl.pallas_call(
        lstm_fwd_kernel,
        out_shape=jax.ShapeDtypeStruct((B_PAD, LANES), jnp.float32),
        in_specs=[
            pl.BlockSpec(memory_space=pltpu.MemorySpace.SMEM),   # token ids
            pl.BlockSpec(memory_space=pltpu.MemorySpace.VMEM),   # emb_proj
            pl.BlockSpec(memory_space=pltpu.MemorySpace.VMEM),   # w_big
            pl.BlockSpec(memory_space=pltpu.MemorySpace.VMEM),   # head slab
        ],
        out_specs=pl.BlockSpec(memory_space=pltpu.MemorySpace.VMEM),
        scratch_shapes=[pltpu.VMEM((T * B_PAD, 4 * HIDDEN_DIM), jnp.float32)],
    )(ids_flat, prepared["emb_proj"], prepared["w_big"], prepared["head"])

    return out[:B, :OUTPUT_DIM]


# ---------------------------------------------------------------------------
# Pure-JAX reference (mirrors PyTorch nn.LSTM semantics) for validation
# ---------------------------------------------------------------------------
def reference_forward(params, input_ids):
    x = jnp.take(params["embedding"], input_ids, axis=0)          # (B, T, E)
    B = x.shape[0]
    H = HIDDEN_DIM
    h_seq = x
    for l in range(NUM_LAYERS):
        w_ih = params[f"w_ih_l{l}"]
        w_hh = params[f"w_hh_l{l}"]
        b = params[f"b_ih_l{l}"] + params[f"b_hh_l{l}"]

        def step(carry, x_t):
            h, c = carry
            gates = x_t @ w_ih.T + h @ w_hh.T + b
            i_g, f_g, g_g, o_g = jnp.split(gates, 4, axis=-1)
            i_g = jax.nn.sigmoid(i_g)
            f_g = jax.nn.sigmoid(f_g)
            g_g = jnp.tanh(g_g)
            o_g = jax.nn.sigmoid(o_g)
            c = f_g * c + i_g * g_g
            h = o_g * jnp.tanh(c)
            return (h, c), h

        init = (jnp.zeros((B, H), jnp.float32), jnp.zeros((B, H), jnp.float32))
        _, hs = lax.scan(step, init, jnp.transpose(h_seq, (1, 0, 2)))
        h_seq = jnp.transpose(hs, (1, 0, 2))
    final = h_seq[:, -1, :]
    return final @ params["w_fc"].T + params["b_fc"]


# ---------------------------------------------------------------------------
# Deterministic parameter init + run
# ---------------------------------------------------------------------------
def init_params(key):
    H = HIDDEN_DIM
    k = 1.0 / jnp.sqrt(H)
    keys = jax.random.split(key, 16)

    def u(rng, shape):
        return jax.random.uniform(rng, shape, jnp.float32, -k, k)

    params = {
        "embedding": jax.random.normal(keys[0], (VOCAB_SIZE, EMBED_DIM),
                                       jnp.float32),
        "w_ih_l0": u(keys[1], (4 * H, EMBED_DIM)),
        "w_hh_l0": u(keys[2], (4 * H, H)),
        "b_ih_l0": u(keys[3], (4 * H,)),
        "b_hh_l0": u(keys[4], (4 * H,)),
        "w_ih_l1": u(keys[5], (4 * H, H)),
        "w_hh_l1": u(keys[6], (4 * H, H)),
        "b_ih_l1": u(keys[7], (4 * H,)),
        "b_hh_l1": u(keys[8], (4 * H,)),
        "w_fc": u(keys[9], (OUTPUT_DIM, H)),
        "b_fc": u(keys[10], (OUTPUT_DIM,)),
    }
    return params


if __name__ == "__main__":
    key = jax.random.PRNGKey(0)
    pkey, dkey = jax.random.split(key)
    params = init_params(pkey)
    prepared = prepare_params(params)          # one-time weight packing

    input_ids = jax.random.randint(dkey, (BATCH, SEQ_LEN), 0, VOCAB_SIZE,
                                   dtype=jnp.int32)

    out = lstm_classifier_forward(prepared, input_ids)
    out = jax.block_until_ready(out)

    ref = jax.block_until_ready(reference_forward(params, input_ids))
    assert out.shape == (BATCH, OUTPUT_DIM)
    assert jnp.allclose(out, ref, atol=1e-4, rtol=1e-4), (out, ref)

    print("KERNEL_OK")
</pallas_src>

<mosaic_0001>
module attributes {stable_mosaic.version = 11 : i64} {
  func.func @lstm_fwd_kernel(%arg0: memref<16xi32, #tpu.memory_space<smem>>, %arg1: memref<56x128xf32, #tpu.memory_space<vmem>>, %arg2: memref<64x256xf32, #tpu.memory_space<vmem>>, %arg3: memref<40x128xf32, #tpu.memory_space<vmem>>, %arg4: memref<8x128xf32, #tpu.memory_space<vmem>>, %arg5: memref<64x128xf32, #tpu.memory_space<vmem>>) attributes {dimension_semantics = [], scalar_prefetch = 0 : i64, scratch_operands = 1 : i64, tpu.core_type = #tpu.core_type<tc>} {
    %cst = arith.constant 0.000000e+00 : f32
    %0 = vector.broadcast %cst : f32 to vector<64x128xf32>
    %c0 = arith.constant 0 : index
    %c0_0 = arith.constant 0 : index
    %1 = vector.load %arg5[%c0, %c0_0] : memref<64x128xf32, #tpu.memory_space<vmem>>, vector<64x128xf32>
    tpu.vector_store %arg5[%c0, %c0_0], %0 {strides = array<i32>} : memref<64x128xf32, #tpu.memory_space<vmem>>, vector<64x128xf32>,
    %c0_1 = arith.constant 0 : index
    %2 = memref.load %arg0[%c0_1] : memref<16xi32, #tpu.memory_space<smem>>
    %3 = arith.index_cast %2 : i32 to index
    %c0_2 = arith.constant 0 : index
    %4 = vector.load %arg1[%3, %c0_2] : memref<56x128xf32, #tpu.memory_space<vmem>>, vector<1x128xf32>
    %c0_3 = arith.constant 0 : index
    %c0_4 = arith.constant 0 : index
    %5 = vector.load %arg5[%c0_3, %c0_4] : memref<64x128xf32, #tpu.memory_space<vmem>>, vector<1x128xf32>
    tpu.vector_store %arg5[%c0_3, %c0_4], %4 {strides = array<i32>} : memref<64x128xf32, #tpu.memory_space<vmem>>, vector<1x128xf32>,
    %c8 = arith.constant 8 : index
    %6 = memref.load %arg0[%c8] : memref<16xi32, #tpu.memory_space<smem>>
    %7 = arith.index_cast %6 : i32 to index
    %c0_5 = arith.constant 0 : index
    %8 = vector.load %arg1[%7, %c0_5] : memref<56x128xf32, #tpu.memory_space<vmem>>, vector<1x128xf32>
    %c1 = arith.constant 1 : index
    %c0_6 = arith.constant 0 : index
    %9 = vector.load %arg5[%c1, %c0_6] : memref<64x128xf32, #tpu.memory_space<vmem>>, vector<1x128xf32>
    tpu.vector_store %arg5[%c1, %c0_6], %8 {strides = array<i32>} : memref<64x128xf32, #tpu.memory_space<vmem>>, vector<1x128xf32>,
    %c1_7 = arith.constant 1 : index
    %10 = memref.load %arg0[%c1_7] : memref<16xi32, #tpu.memory_space<smem>>
    %11 = arith.index_cast %10 : i32 to index
    %c0_8 = arith.constant 0 : index
    %12 = vector.load %arg1[%11, %c0_8] : memref<56x128xf32, #tpu.memory_space<vmem>>, vector<1x128xf32>
    %c8_9 = arith.constant 8 : index
    %c0_10 = arith.constant 0 : index
    %13 = vector.load %arg5[%c8_9, %c0_10] : memref<64x128xf32, #tpu.memory_space<vmem>>, vector<1x128xf32>
    tpu.vector_store %arg5[%c8_9, %c0_10], %12 {strides = array<i32>} : memref<64x128xf32, #tpu.memory_space<vmem>>, vector<1x128xf32>,
    %c9 = arith.constant 9 : index
    %14 = memref.load %arg0[%c9] : memref<16xi32, #tpu.memory_space<smem>>
    %15 = arith.index_cast %14 : i32 to index
    %c0_11 = arith.constant 0 : index
    %16 = vector.load %arg1[%15, %c0_11] : memref<56x128xf32, #tpu.memory_space<vmem>>, vector<1x128xf32>
    %c9_12 = arith.constant 9 : index
    %c0_13 = arith.constant 0 : index
    %17 = vector.load %arg5[%c9_12, %c0_13] : memref<64x128xf32, #tpu.memory_space<vmem>>, vector<1x128xf32>
    tpu.vector_store %arg5[%c9_12, %c0_13], %16 {strides = array<i32>} : memref<64x128xf32, #tpu.memory_space<vmem>>, vector<1x128xf32>,
    %c2 = arith.constant 2 : index
    %18 = memref.load %arg0[%c2] : memref<16xi32, #tpu.memory_space<smem>>
    %19 = arith.index_cast %18 : i32 to index
    %c0_14 = arith.constant 0 : index
    %20 = vector.load %arg1[%19, %c0_14] : memref<56x128xf32, #tpu.memory_space<vmem>>, vector<1x128xf32>
    %c16 = arith.constant 16 : index
    %c0_15 = arith.constant 0 : index
    %21 = vector.load %arg5[%c16, %c0_15] : memref<64x128xf32, #tpu.memory_space<vmem>>, vector<1x128xf32>
    tpu.vector_store %arg5[%c16, %c0_15], %20 {strides = array<i32>} : memref<64x128xf32, #tpu.memory_space<vmem>>, vector<1x128xf32>,
    %c10 = arith.constant 10 : index
    %22 = memref.load %arg0[%c10] : memref<16xi32, #tpu.memory_space<smem>>
    %23 = arith.index_cast %22 : i32 to index
    %c0_16 = arith.constant 0 : index
    %24 = vector.load %arg1[%23, %c0_16] : memref<56x128xf32, #tpu.memory_space<vmem>>, vector<1x128xf32>
    %c17 = arith.constant 17 : index
    %c0_17 = arith.constant 0 : index
    %25 = vector.load %arg5[%c17, %c0_17] : memref<64x128xf32, #tpu.memory_space<vmem>>, vector<1x128xf32>
    tpu.vector_store %arg5[%c17, %c0_17], %24 {strides = array<i32>} : memref<64x128xf32, #tpu.memory_space<vmem>>, vector<1x128xf32>,
    %c3 = arith.constant 3 : index
    %26 = memref.load %arg0[%c3] : memref<16xi32, #tpu.memory_space<smem>>
    %27 = arith.index_cast %26 : i32 to index
    %c0_18 = arith.constant 0 : index
    %28 = vector.load %arg1[%27, %c0_18] : memref<56x128xf32, #tpu.memory_space<vmem>>, vector<1x128xf32>
    %c24 = arith.constant 24 : index
    %c0_19 = arith.constant 0 : index
    %29 = vector.load %arg5[%c24, %c0_19] : memref<64x128xf32, #tpu.memory_space<vmem>>, vector<1x128xf32>
    tpu.vector_store %arg5[%c24, %c0_19], %28 {strides = array<i32>} : memref<64x128xf32, #tpu.memory_space<vmem>>, vector<1x128xf32>,
    %c11 = arith.constant 11 : index
    %30 = memref.load %arg0[%c11] : memref<16xi32, #tpu.memory_space<smem>>
    %31 = arith.index_cast %30 : i32 to index
    %c0_20 = arith.constant 0 : index
    %32 = vector.load %arg1[%31, %c0_20] : memref<56x128xf32, #tpu.memory_space<vmem>>, vector<1x128xf32>
    %c25 = arith.constant 25 : index
    %c0_21 = arith.constant 0 : index
    %33 = vector.load %arg5[%c25, %c0_21] : memref<64x128xf32, #tpu.memory_space<vmem>>, vector<1x128xf32>
    tpu.vector_store %arg5[%c25, %c0_21], %32 {strides = array<i32>} : memref<64x128xf32, #tpu.memory_space<vmem>>, vector<1x128xf32>,
    %c4 = arith.constant 4 : index
    %34 = memref.load %arg0[%c4] : memref<16xi32, #tpu.memory_space<smem>>
    %35 = arith.index_cast %34 : i32 to index
    %c0_22 = arith.constant 0 : index
    %36 = vector.load %arg1[%35, %c0_22] : memref<56x128xf32, #tpu.memory_space<vmem>>, vector<1x128xf32>
    %c32 = arith.constant 32 : index
    %c0_23 = arith.constant 0 : index
    %37 = vector.load %arg5[%c32, %c0_23] : memref<64x128xf32, #tpu.memory_space<vmem>>, vector<1x128xf32>
    tpu.vector_store %arg5[%c32, %c0_23], %36 {strides = array<i32>} : memref<64x128xf32, #tpu.memory_space<vmem>>, vector<1x128xf32>,
    %c12 = arith.constant 12 : index
    %38 = memref.load %arg0[%c12] : memref<16xi32, #tpu.memory_space<smem>>
    %39 = arith.index_cast %38 : i32 to index
    %c0_24 = arith.constant 0 : index
    %40 = vector.load %arg1[%39, %c0_24] : memref<56x128xf32, #tpu.memory_space<vmem>>, vector<1x128xf32>
    %c33 = arith.constant 33 : index
    %c0_25 = arith.constant 0 : index
    %41 = vector.load %arg5[%c33, %c0_25] : memref<64x128xf32, #tpu.memory_space<vmem>>, vector<1x128xf32>
    tpu.vector_store %arg5[%c33, %c0_25], %40 {strides = array<i32>} : memref<64x128xf32, #tpu.memory_space<vmem>>, vector<1x128xf32>,
    %c5 = arith.constant 5 : index
    %42 = memref.load %arg0[%c5] : memref<16xi32, #tpu.memory_space<smem>>
    %43 = arith.index_cast %42 : i32 to index
    %c0_26 = arith.constant 0 : index
    %44 = vector.load %arg1[%43, %c0_26] : memref<56x128xf32, #tpu.memory_space<vmem>>, vector<1x128xf32>
    %c40 = arith.constant 40 : index
    %c0_27 = arith.constant 0 : index
    %45 = vector.load %arg5[%c40, %c0_27] : memref<64x128xf32, #tpu.memory_space<vmem>>, vector<1x128xf32>
    tpu.vector_store %arg5[%c40, %c0_27], %44 {strides = array<i32>} : memref<64x128xf32, #tpu.memory_space<vmem>>, vector<1x128xf32>,
    %c13 = arith.constant 13 : index
    %46 = memref.load %arg0[%c13] : memref<16xi32, #tpu.memory_space<smem>>
    %47 = arith.index_cast %46 : i32 to index
    %c0_28 = arith.constant 0 : index
    %48 = vector.load %arg1[%47, %c0_28] : memref<56x128xf32, #tpu.memory_space<vmem>>, vector<1x128xf32>
    %c41 = arith.constant 41 : index
    %c0_29 = arith.constant 0 : index
    %49 = vector.load %arg5[%c41, %c0_29] : memref<64x128xf32, #tpu.memory_space<vmem>>, vector<1x128xf32>
    tpu.vector_store %arg5[%c41, %c0_29], %48 {strides = array<i32>} : memref<64x128xf32, #tpu.memory_space<vmem>>, vector<1x128xf32>,
    %c6 = arith.constant 6 : index
    %50 = memref.load %arg0[%c6] : memref<16xi32, #tpu.memory_space<smem>>
    %51 = arith.index_cast %50 : i32 to index
    %c0_30 = arith.constant 0 : index
    %52 = vector.load %arg1[%51, %c0_30] : memref<56x128xf32, #tpu.memory_space<vmem>>, vector<1x128xf32>
    %c48 = arith.constant 48 : index
    %c0_31 = arith.constant 0 : index
    %53 = vector.load %arg5[%c48, %c0_31] : memref<64x128xf32, #tpu.memory_space<vmem>>, vector<1x128xf32>
    tpu.vector_store %arg5[%c48, %c0_31], %52 {strides = array<i32>} : memref<64x128xf32, #tpu.memory_space<vmem>>, vector<1x128xf32>,
    %c14 = arith.constant 14 : index
    %54 = memref.load %arg0[%c14] : memref<16xi32, #tpu.memory_space<smem>>
    %55 = arith.index_cast %54 : i32 to index
    %c0_32 = arith.constant 0 : index
    %56 = vector.load %arg1[%55, %c0_32] : memref<56x128xf32, #tpu.memory_space<vmem>>, vector<1x128xf32>
    %c49 = arith.constant 49 : index
    %c0_33 = arith.constant 0 : index
    %57 = vector.load %arg5[%c49, %c0_33] : memref<64x128xf32, #tpu.memory_space<vmem>>, vector<1x128xf32>
    tpu.vector_store %arg5[%c49, %c0_33], %56 {strides = array<i32>} : memref<64x128xf32, #tpu.memory_space<vmem>>, vector<1x128xf32>,
    %c7 = arith.constant 7 : index
    %58 = memref.load %arg0[%c7] : memref<16xi32, #tpu.memory_space<smem>>
    %59 = arith.index_cast %58 : i32 to index
    %c0_34 = arith.constant 0 : index
    %60 = vector.load %arg1[%59, %c0_34] : memref<56x128xf32, #tpu.memory_space<vmem>>, vector<1x128xf32>
    %c56 = arith.constant 56 : index
    %c0_35 = arith.constant 0 : index
    %61 = vector.load %arg5[%c56, %c0_35] : memref<64x128xf32, #tpu.memory_space<vmem>>, vector<1x128xf32>
    tpu.vector_store %arg5[%c56, %c0_35], %60 {strides = array<i32>} : memref<64x128xf32, #tpu.memory_space<vmem>>, vector<1x128xf32>,
    %c15 = arith.constant 15 : index
    %62 = memref.load %arg0[%c15] : memref<16xi32, #tpu.memory_space<smem>>
    %63 = arith.index_cast %62 : i32 to index
    %c0_36 = arith.constant 0 : index
    %64 = vector.load %arg1[%63, %c0_36] : memref<56x128xf32, #tpu.memory_space<vmem>>, vector<1x128xf32>
    %c57 = arith.constant 57 : index
    %c0_37 = arith.constant 0 : index
    %65 = vector.load %arg5[%c57, %c0_37] : memref<64x128xf32, #tpu.memory_space<vmem>>, vector<1x128xf32>
    tpu.vector_store %arg5[%c57, %c0_37], %64 {strides = array<i32>} : memref<64x128xf32, #tpu.memory_space<vmem>>, vector<1x128xf32>,
    %c0_38 = arith.constant 0 : index
    %c0_39 = arith.constant 0 : index
    %66 = vector.load %arg2[%c0_38, %c0_39] : memref<64x256xf32, #tpu.memory_space<vmem>>, vector<64x256xf32>
    %c0_40 = arith.constant 0 : index
    %c0_41 = arith.constant 0 : index
    %67 = vector.load %arg3[%c0_40, %c0_41] : memref<40x128xf32, #tpu.memory_space<vmem>>, vector<32x128xf32>
    %c32_42 = arith.constant 32 : index
    %c0_43 = arith.constant 0 : index
    %68 = vector.load %arg3[%c32_42, %c0_43] : memref<40x128xf32, #tpu.memory_space<vmem>>, vector<1x128xf32>
    %c33_44 = arith.constant 33 : index
    %c0_45 = arith.constant 0 : index
    %69 = vector.load %arg3[%c33_44, %c0_45] : memref<40x128xf32, #tpu.memory_space<vmem>>, vector<1x128xf32>
    %70 = vector.shape_cast %69 : vector<1x128xf32> to vector<1x128xf32>
    %71 = vector.broadcast %70 : vector<1x128xf32> to vector<8x128xf32>
    %cst_46 = arith.constant 0.000000e+00 : f32
    %72 = vector.broadcast %cst_46 : f32 to vector<8x32xf32>
    %c0_47 = arith.constant 0 : index
    %c0_48 = arith.constant 0 : index
    %73 = vector.load %arg5[%c0_47, %c0_48] : memref<64x128xf32, #tpu.memory_space<vmem>>, vector<8x128xf32>
    %cst_49 = arith.constant 5.000000e-01 : f32
    %74 = vector.broadcast %cst_49 : f32 to vector<8x128xf32>
    %75 = arith.mulf %74, %73 : vector<8x128xf32>
    %76 = math.tanh %75 : vector<8x128xf32>
    %cst_50 = arith.constant 5.000000e-01 : f32
    %77 = vector.broadcast %cst_50 : f32 to vector<8x128xf32>
    %78 = arith.mulf %77, %76 : vector<8x128xf32>
    %cst_51 = arith.constant 5.000000e-01 : f32
    %79 = vector.broadcast %cst_51 : f32 to vector<8x128xf32>
    %80 = arith.addf %78, %79 : vector<8x128xf32>
    %81 = math.tanh %73 : vector<8x128xf32>
    %82 = vector.extract_strided_slice %80 {offsets = [0, 0], sizes = [8, 32], strides = [1, 1]} : vector<8x128xf32> to vector<8x32xf32>
    %83 = vector.extract_strided_slice %80 {offsets = [0, 32], sizes = [8, 32], strides = [1, 1]} : vector<8x128xf32> to vector<8x32xf32>
    %84 = vector.extract_strided_slice %81 {offsets = [0, 64], sizes = [8, 32], strides = [1, 1]} : vector<8x128xf32> to vector<8x32xf32>
    %85 = vector.extract_strided_slice %80 {offsets = [0, 96], sizes = [8, 32], strides = [1, 1]} : vector<8x128xf32> to vector<8x32xf32>
    %86 = arith.mulf %83, %72 : vector<8x32xf32>
    %87 = arith.mulf %82, %84 : vector<8x32xf32>
    %88 = arith.addf %86, %87 : vector<8x32xf32>
    %89 = math.tanh %88 : vector<8x32xf32>
    %90 = arith.mulf %85, %89 : vector<8x32xf32>
    %91 = tpu.concatenate %90, %72 in 1 : vector<8x32xf32>, vector<8x32xf32> -> vector<8x64xf32>
    %cst_52 = arith.constant dense<0.000000e+00> : vector<8x256xf32>
    %92 = tpu.matmul %91, %66, %cst_52 {dimension_numbers = #tpu.dot_dimension_numbers<[1], [0], [0], [1], [0, 0, 1, 1], [], []>} : vector<8x64xf32>, vector<64x256xf32>, vector<8x256xf32> -> vector<8x256xf32>
    %93 = vector.extract_strided_slice %92 {offsets = [0, 128], sizes = [8, 128], strides = [1, 1]} : vector<8x256xf32> to vector<8x128xf32>
    %94 = arith.addf %93, %71 : vector<8x128xf32>
    %cst_53 = arith.constant 5.000000e-01 : f32
    %95 = vector.broadcast %cst_53 : f32 to vector<8x128xf32>
    %96 = arith.mulf %95, %94 : vector<8x128xf32>
    %97 = math.tanh %96 : vector<8x128xf32>
    %cst_54 = arith.constant 5.000000e-01 : f32
    %98 = vector.broadcast %cst_54 : f32 to vector<8x128xf32>
    %99 = arith.mulf %98, %97 : vector<8x128xf32>
    %cst_55 = arith.constant 5.000000e-01 : f32
    %100 = vector.broadcast %cst_55 : f32 to vector<8x128xf32>
    %101 = arith.addf %99, %100 : vector<8x128xf32>
    %102 = math.tanh %94 : vector<8x128xf32>
    %103 = vector.extract_strided_slice %101 {offsets = [0, 0], sizes = [8, 32], strides = [1, 1]} : vector<8x128xf32> to vector<8x32xf32>
    %104 = vector.extract_strided_slice %101 {offsets = [0, 32], sizes = [8, 32], strides = [1, 1]} : vector<8x128xf32> to vector<8x32xf32>
    %105 = vector.extract_strided_slice %102 {offsets = [0, 64], sizes = [8, 32], strides = [1, 1]} : vector<8x128xf32> to vector<8x32xf32>
    %106 = vector.extract_strided_slice %101 {offsets = [0, 96], sizes = [8, 32], strides = [1, 1]} : vector<8x128xf32> to vector<8x32xf32>
    %107 = arith.mulf %104, %72 : vector<8x32xf32>
    %108 = arith.mulf %103, %105 : vector<8x32xf32>
    %109 = arith.addf %107, %108 : vector<8x32xf32>
    %110 = math.tanh %109 : vector<8x32xf32>
    %111 = arith.mulf %106, %110 : vector<8x32xf32>
    %c8_56 = arith.constant 8 : index
    %c0_57 = arith.constant 0 : index
    %112 = vector.load %arg5[%c8_56, %c0_57] : memref<64x128xf32, #tpu.memory_space<vmem>>, vector<8x128xf32>
    %113 = vector.extract_strided_slice %92 {offsets = [0, 0], sizes = [8, 128], strides = [1, 1]} : vector<8x256xf32> to vector<8x128xf32>
    %114 = arith.addf %112, %113 : vector<8x128xf32>
    %cst_58 = arith.constant 5.000000e-01 : f32
    %115 = vector.broadcast %cst_58 : f32 to vector<8x128xf32>
    %116 = arith.mulf %115, %114 : vector<8x128xf32>
    %117 = math.tanh %116 : vector<8x128xf32>
    %cst_59 = arith.constant 5.000000e-01 : f32
    %118 = vector.broadcast %cst_59 : f32 to vector<8x128xf32>
    %119 = arith.mulf %118, %117 : vector<8x128xf32>
    %cst_60 = arith.constant 5.000000e-01 : f32
    %120 = vector.broadcast %cst_60 : f32 to vector<8x128xf32>
    %121 = arith.addf %119, %120 : vector<8x128xf32>
    %122 = math.tanh %114 : vector<8x128xf32>
    %123 = vector.extract_strided_slice %121 {offsets = [0, 0], sizes = [8, 32], strides = [1, 1]} : vector<8x128xf32> to vector<8x32xf32>
    %124 = vector.extract_strided_slice %121 {offsets = [0, 32], sizes = [8, 32], strides = [1, 1]} : vector<8x128xf32> to vector<8x32xf32>
    %125 = vector.extract_strided_slice %122 {offsets = [0, 64], sizes = [8, 32], strides = [1, 1]} : vector<8x128xf32> to vector<8x32xf32>
    %126 = vector.extract_strided_slice %121 {offsets = [0, 96], sizes = [8, 32], strides = [1, 1]} : vector<8x128xf32> to vector<8x32xf32>
    %127 = arith.mulf %124, %88 : vector<8x32xf32>
    %128 = arith.mulf %123, %125 : vector<8x32xf32>
    %129 = arith.addf %127, %128 : vector<8x32xf32>
    %130 = math.tanh %129 : vector<8x32xf32>
    %131 = arith.mulf %126, %130 : vector<8x32xf32>
    %132 = tpu.concatenate %131, %111 in 1 : vector<8x32xf32>, vector<8x32xf32> -> vector<8x64xf32>
    %cst_61 = arith.constant dense<0.000000e+00> : vector<8x256xf32>
    %133 = tpu.matmul %132, %66, %cst_61 {dimension_numbers = #tpu.dot_dimension_numbers<[1], [0], [0], [1], [0, 0, 1, 1], [], []>} : vector<8x64xf32>, vector<64x256xf32>, vector<8x256xf32> -> vector<8x256xf32>
    %134 = vector.extract_strided_slice %133 {offsets = [0, 128], sizes = [8, 128], strides = [1, 1]} : vector<8x256xf32> to vector<8x128xf32>
    %135 = arith.addf %134, %71 : vector<8x128xf32>
    %cst_62 = arith.constant 5.000000e-01 : f32
    %136 = vector.broadcast %cst_62 : f32 to vector<8x128xf32>
    %137 = arith.mulf %136, %135 : vector<8x128xf32>
    %138 = math.tanh %137 : vector<8x128xf32>
    %cst_63 = arith.constant 5.000000e-01 : f32
    %139 = vector.broadcast %cst_63 : f32 to vector<8x128xf32>
    %140 = arith.mulf %139, %138 : vector<8x128xf32>
    %cst_64 = arith.constant 5.000000e-01 : f32
    %141 = vector.broadcast %cst_64 : f32 to vector<8x128xf32>
    %142 = arith.addf %140, %141 : vector<8x128xf32>
    %143 = math.tanh %135 : vector<8x128xf32>
    %144 = vector.extract_strided_slice %142 {offsets = [0, 0], sizes = [8, 32], strides = [1, 1]} : vector<8x128xf32> to vector<8x32xf32>
    %145 = vector.extract_strided_slice %142 {offsets = [0, 32], sizes = [8, 32], strides = [1, 1]} : vector<8x128xf32> to vector<8x32xf32>
    %146 = vector.extract_strided_slice %143 {offsets = [0, 64], sizes = [8, 32], strides = [1, 1]} : vector<8x128xf32> to vector<8x32xf32>
    %147 = vector.extract_strided_slice %142 {offsets = [0, 96], sizes = [8, 32], strides = [1, 1]} : vector<8x128xf32> to vector<8x32xf32>
    %148 = arith.mulf %145, %109 : vector<8x32xf32>
    %149 = arith.mulf %144, %146 : vector<8x32xf32>
    %150 = arith.addf %148, %149 : vector<8x32xf32>
    %151 = math.tanh %150 : vector<8x32xf32>
    %152 = arith.mulf %147, %151 : vector<8x32xf32>
    %c16_65 = arith.constant 16 : index
    %c0_66 = arith.constant 0 : index
    %153 = vector.load %arg5[%c16_65, %c0_66] : memref<64x128xf32, #tpu.memory_space<vmem>>, vector<8x128xf32>
    %154 = vector.extract_strided_slice %133 {offsets = [0, 0], sizes = [8, 128], strides = [1, 1]} : vector<8x256xf32> to vector<8x128xf32>
    %155 = arith.addf %153, %154 : vector<8x128xf32>
    %cst_67 = arith.constant 5.000000e-01 : f32
    %156 = vector.broadcast %cst_67 : f32 to vector<8x128xf32>
    %157 = arith.mulf %156, %155 : vector<8x128xf32>
    %158 = math.tanh %157 : vector<8x128xf32>
    %cst_68 = arith.constant 5.000000e-01 : f32
    %159 = vector.broadcast %cst_68 : f32 to vector<8x128xf32>
    %160 = arith.mulf %159, %158 : vector<8x128xf32>
    %cst_69 = arith.constant 5.000000e-01 : f32
    %161 = vector.broadcast %cst_69 : f32 to vector<8x128xf32>
    %162 = arith.addf %160, %161 : vector<8x128xf32>
    %163 = math.tanh %155 : vector<8x128xf32>
    %164 = vector.extract_strided_slice %162 {offsets = [0, 0], sizes = [8, 32], strides = [1, 1]} : vector<8x128xf32> to vector<8x32xf32>
    %165 = vector.extract_strided_slice %162 {offsets = [0, 32], sizes = [8, 32], strides = [1, 1]} : vector<8x128xf32> to vector<8x32xf32>
    %166 = vector.extract_strided_slice %163 {offsets = [0, 64], sizes = [8, 32], strides = [1, 1]} : vector<8x128xf32> to vector<8x32xf32>
    %167 = vector.extract_strided_slice %162 {offsets = [0, 96], sizes = [8, 32], strides = [1, 1]} : vector<8x128xf32> to vector<8x32xf32>
    %168 = arith.mulf %165, %129 : vector<8x32xf32>
    %169 = arith.mulf %164, %166 : vector<8x32xf32>
    %170 = arith.addf %168, %169 : vector<8x32xf32>
    %171 = math.tanh %170 : vector<8x32xf32>
    %172 = arith.mulf %167, %171 : vector<8x32xf32>
    %173 = tpu.concatenate %172, %152 in 1 : vector<8x32xf32>, vector<8x32xf32> -> vector<8x64xf32>
    %cst_70 = arith.constant dense<0.000000e+00> : vector<8x256xf32>
    %174 = tpu.matmul %173, %66, %cst_70 {dimension_numbers = #tpu.dot_dimension_numbers<[1], [0], [0], [1], [0, 0, 1, 1], [], []>} : vector<8x64xf32>, vector<64x256xf32>, vector<8x256xf32> -> vector<8x256xf32>
    %175 = vector.extract_strided_slice %174 {offsets = [0, 128], sizes = [8, 128], strides = [1, 1]} : vector<8x256xf32> to vector<8x128xf32>
    %176 = arith.addf %175, %71 : vector<8x128xf32>
    %cst_71 = arith.constant 5.000000e-01 : f32
    %177 = vector.broadcast %cst_71 : f32 to vector<8x128xf32>
    %178 = arith.mulf %177, %176 : vector<8x128xf32>
    %179 = math.tanh %178 : vector<8x128xf32>
    %cst_72 = arith.constant 5.000000e-01 : f32
    %180 = vector.broadcast %cst_72 : f32 to vector<8x128xf32>
    %181 = arith.mulf %180, %179 : vector<8x128xf32>
    %cst_73 = arith.constant 5.000000e-01 : f32
    %182 = vector.broadcast %cst_73 : f32 to vector<8x128xf32>
    %183 = arith.addf %181, %182 : vector<8x128xf32>
    %184 = math.tanh %176 : vector<8x128xf32>
    %185 = vector.extract_strided_slice %183 {offsets = [0, 0], sizes = [8, 32], strides = [1, 1]} : vector<8x128xf32> to vector<8x32xf32>
    %186 = vector.extract_strided_slice %183 {offsets = [0, 32], sizes = [8, 32], strides = [1, 1]} : vector<8x128xf32> to vector<8x32xf32>
    %187 = vector.extract_strided_slice %184 {offsets = [0, 64], sizes = [8, 32], strides = [1, 1]} : vector<8x128xf32> to vector<8x32xf32>
    %188 = vector.extract_strided_slice %183 {offsets = [0, 96], sizes = [8, 32], strides = [1, 1]} : vector<8x128xf32> to vector<8x32xf32>
    %189 = arith.mulf %186, %150 : vector<8x32xf32>
    %190 = arith.mulf %185, %187 : vector<8x32xf32>
    %191 = arith.addf %189, %190 : vector<8x32xf32>
    %192 = math.tanh %191 : vector<8x32xf32>
    %193 = arith.mulf %188, %192 : vector<8x32xf32>
    %c24_74 = arith.constant 24 : index
    %c0_75 = arith.constant 0 : index
    %194 = vector.load %arg5[%c24_74, %c0_75] : memref<64x128xf32, #tpu.memory_space<vmem>>, vector<8x128xf32>
    %195 = vector.extract_strided_slice %174 {offsets = [0, 0], sizes = [8, 128], strides = [1, 1]} : vector<8x256xf32> to vector<8x128xf32>
    %196 = arith.addf %194, %195 : vector<8x128xf32>
    %cst_76 = arith.constant 5.000000e-01 : f32
    %197 = vector.broadcast %cst_76 : f32 to vector<8x128xf32>
    %198 = arith.mulf %197, %196 : vector<8x128xf32>
    %199 = math.tanh %198 : vector<8x128xf32>
    %cst_77 = arith.constant 5.000000e-01 : f32
    %200 = vector.broadcast %cst_77 : f32 to vector<8x128xf32>
    %201 = arith.mulf %200, %199 : vector<8x128xf32>
    %cst_78 = arith.constant 5.000000e-01 : f32
    %202 = vector.broadcast %cst_78 : f32 to vector<8x128xf32>
    %203 = arith.addf %201, %202 : vector<8x128xf32>
    %204 = math.tanh %196 : vector<8x128xf32>
    %205 = vector.extract_strided_slice %203 {offsets = [0, 0], sizes = [8, 32], strides = [1, 1]} : vector<8x128xf32> to vector<8x32xf32>
    %206 = vector.extract_strided_slice %203 {offsets = [0, 32], sizes = [8, 32], strides = [1, 1]} : vector<8x128xf32> to vector<8x32xf32>
    %207 = vector.extract_strided_slice %204 {offsets = [0, 64], sizes = [8, 32], strides = [1, 1]} : vector<8x128xf32> to vector<8x32xf32>
    %208 = vector.extract_strided_slice %203 {offsets = [0, 96], sizes = [8, 32], strides = [1, 1]} : vector<8x128xf32> to vector<8x32xf32>
    %209 = arith.mulf %206, %170 : vector<8x32xf32>
    %210 = arith.mulf %205, %207 : vector<8x32xf32>
    %211 = arith.addf %209, %210 : vector<8x32xf32>
    %212 = math.tanh %211 : vector<8x32xf32>
    %213 = arith.mulf %208, %212 : vector<8x32xf32>
    %214 = tpu.concatenate %213, %193 in 1 : vector<8x32xf32>, vector<8x32xf32> -> vector<8x64xf32>
    %cst_79 = arith.constant dense<0.000000e+00> : vector<8x256xf32>
    %215 = tpu.matmul %214, %66, %cst_79 {dimension_numbers = #tpu.dot_dimension_numbers<[1], [0], [0], [1], [0, 0, 1, 1], [], []>} : vector<8x64xf32>, vector<64x256xf32>, vector<8x256xf32> -> vector<8x256xf32>
    %216 = vector.extract_strided_slice %215 {offsets = [0, 128], sizes = [8, 128], strides = [1, 1]} : vector<8x256xf32> to vector<8x128xf32>
    %217 = arith.addf %216, %71 : vector<8x128xf32>
    %cst_80 = arith.constant 5.000000e-01 : f32
    %218 = vector.broadcast %cst_80 : f32 to vector<8x128xf32>
    %219 = arith.mulf %218, %217 : vector<8x128xf32>
    %220 = math.tanh %219 : vector<8x128xf32>
    %cst_81 = arith.constant 5.000000e-01 : f32
    %221 = vector.broadcast %cst_81 : f32 to vector<8x128xf32>
    %222 = arith.mulf %221, %220 : vector<8x128xf32>
    %cst_82 = arith.constant 5.000000e-01 : f32
    %223 = vector.broadcast %cst_82 : f32 to vector<8x128xf32>
    %224 = arith.addf %222, %223 : vector<8x128xf32>
    %225 = math.tanh %217 : vector<8x128xf32>
    %226 = vector.extract_strided_slice %224 {offsets = [0, 0], sizes = [8, 32], strides = [1, 1]} : vector<8x128xf32> to vector<8x32xf32>
    %227 = vector.extract_strided_slice %224 {offsets = [0, 32], sizes = [8, 32], strides = [1, 1]} : vector<8x128xf32> to vector<8x32xf32>
    %228 = vector.extract_strided_slice %225 {offsets = [0, 64], sizes = [8, 32], strides = [1, 1]} : vector<8x128xf32> to vector<8x32xf32>
    %229 = vector.extract_strided_slice %224 {offsets = [0, 96], sizes = [8, 32], strides = [1, 1]} : vector<8x128xf32> to vector<8x32xf32>
    %230 = arith.mulf %227, %191 : vector<8x32xf32>
    %231 = arith.mulf %226, %228 : vector<8x32xf32>
    %232 = arith.addf %230, %231 : vector<8x32xf32>
    %233 = math.tanh %232 : vector<8x32xf32>
    %234 = arith.mulf %229, %233 : vector<8x32xf32>
    %c32_83 = arith.constant 32 : index
    %c0_84 = arith.constant 0 : index
    %235 = vector.load %arg5[%c32_83, %c0_84] : memref<64x128xf32, #tpu.memory_space<vmem>>, vector<8x128xf32>
    %236 = vector.extract_strided_slice %215 {offsets = [0, 0], sizes = [8, 128], strides = [1, 1]} : vector<8x256xf32> to vector<8x128xf32>
    %237 = arith.addf %235, %236 : vector<8x128xf32>
    %cst_85 = arith.constant 5.000000e-01 : f32
    %238 = vector.broadcast %cst_85 : f32 to vector<8x128xf32>
    %239 = arith.mulf %238, %237 : vector<8x128xf32>
    %240 = math.tanh %239 : vector<8x128xf32>
    %cst_86 = arith.constant 5.000000e-01 : f32
    %241 = vector.broadcast %cst_86 : f32 to vector<8x128xf32>
    %242 = arith.mulf %241, %240 : vector<8x128xf32>
    %cst_87 = arith.constant 5.000000e-01 : f32
    %243 = vector.broadcast %cst_87 : f32 to vector<8x128xf32>
    %244 = arith.addf %242, %243 : vector<8x128xf32>
    %245 = math.tanh %237 : vector<8x128xf32>
    %246 = vector.extract_strided_slice %244 {offsets = [0, 0], sizes = [8, 32], strides = [1, 1]} : vector<8x128xf32> to vector<8x32xf32>
    %247 = vector.extract_strided_slice %244 {offsets = [0, 32], sizes = [8, 32], strides = [1, 1]} : vector<8x128xf32> to vector<8x32xf32>
    %248 = vector.extract_strided_slice %245 {offsets = [0, 64], sizes = [8, 32], strides = [1, 1]} : vector<8x128xf32> to vector<8x32xf32>
    %249 = vector.extract_strided_slice %244 {offsets = [0, 96], sizes = [8, 32], strides = [1, 1]} : vector<8x128xf32> to vector<8x32xf32>
    %250 = arith.mulf %247, %211 : vector<8x32xf32>
    %251 = arith.mulf %246, %248 : vector<8x32xf32>
    %252 = arith.addf %250, %251 : vector<8x32xf32>
    %253 = math.tanh %252 : vector<8x32xf32>
    %254 = arith.mulf %249, %253 : vector<8x32xf32>
    %255 = tpu.concatenate %254, %234 in 1 : vector<8x32xf32>, vector<8x32xf32> -> vector<8x64xf32>
    %cst_88 = arith.constant dense<0.000000e+00> : vector<8x256xf32>
    %256 = tpu.matmul %255, %66, %cst_88 {dimension_numbers = #tpu.dot_dimension_numbers<[1], [0], [0], [1], [0, 0, 1, 1], [], []>} : vector<8x64xf32>, vector<64x256xf32>, vector<8x256xf32> -> vector<8x256xf32>
    %257 = vector.extract_strided_slice %256 {offsets = [0, 128], sizes = [8, 128], strides = [1, 1]} : vector<8x256xf32> to vector<8x128xf32>
    %258 = arith.addf %257, %71 : vector<8x128xf32>
    %cst_89 = arith.constant 5.000000e-01 : f32
    %259 = vector.broadcast %cst_89 : f32 to vector<8x128xf32>
    %260 = arith.mulf %259, %258 : vector<8x128xf32>
    %261 = math.tanh %260 : vector<8x128xf32>
    %cst_90 = arith.constant 5.000000e-01 : f32
    %262 = vector.broadcast %cst_90 : f32 to vector<8x128xf32>
    %263 = arith.mulf %262, %261 : vector<8x128xf32>
    %cst_91 = arith.constant 5.000000e-01 : f32
    %264 = vector.broadcast %cst_91 : f32 to vector<8x128xf32>
    %265 = arith.addf %263, %264 : vector<8x128xf32>
    %266 = math.tanh %258 : vector<8x128xf32>
    %267 = vector.extract_strided_slice %265 {offsets = [0, 0], sizes = [8, 32], strides = [1, 1]} : vector<8x128xf32> to vector<8x32xf32>
    %268 = vector.extract_strided_slice %265 {offsets = [0, 32], sizes = [8, 32], strides = [1, 1]} : vector<8x128xf32> to vector<8x32xf32>
    %269 = vector.extract_strided_slice %266 {offsets = [0, 64], sizes = [8, 32], strides = [1, 1]} : vector<8x128xf32> to vector<8x32xf32>
    %270 = vector.extract_strided_slice %265 {offsets = [0, 96], sizes = [8, 32], strides = [1, 1]} : vector<8x128xf32> to vector<8x32xf32>
    %271 = arith.mulf %268, %232 : vector<8x32xf32>
    %272 = arith.mulf %267, %269 : vector<8x32xf32>
    %273 = arith.addf %271, %272 : vector<8x32xf32>
    %274 = math.tanh %273 : vector<8x32xf32>
    %275 = arith.mulf %270, %274 : vector<8x32xf32>
    %c40_92 = arith.constant 40 : index
    %c0_93 = arith.constant 0 : index
    %276 = vector.load %arg5[%c40_92, %c0_93] : memref<64x128xf32, #tpu.memory_space<vmem>>, vector<8x128xf32>
    %277 = vector.extract_strided_slice %256 {offsets = [0, 0], sizes = [8, 128], strides = [1, 1]} : vector<8x256xf32> to vector<8x128xf32>
    %278 = arith.addf %276, %277 : vector<8x128xf32>
    %cst_94 = arith.constant 5.000000e-01 : f32
    %279 = vector.broadcast %cst_94 : f32 to vector<8x128xf32>
    %280 = arith.mulf %279, %278 : vector<8x128xf32>
    %281 = math.tanh %280 : vector<8x128xf32>
    %cst_95 = arith.constant 5.000000e-01 : f32
    %282 = vector.broadcast %cst_95 : f32 to vector<8x128xf32>
    %283 = arith.mulf %282, %281 : vector<8x128xf32>
    %cst_96 = arith.constant 5.000000e-01 : f32
    %284 = vector.broadcast %cst_96 : f32 to vector<8x128xf32>
    %285 = arith.addf %283, %284 : vector<8x128xf32>
    %286 = math.tanh %278 : vector<8x128xf32>
    %287 = vector.extract_strided_slice %285 {offsets = [0, 0], sizes = [8, 32], strides = [1, 1]} : vector<8x128xf32> to vector<8x32xf32>
    %288 = vector.extract_strided_slice %285 {offsets = [0, 32], sizes = [8, 32], strides = [1, 1]} : vector<8x128xf32> to vector<8x32xf32>
    %289 = vector.extract_strided_slice %286 {offsets = [0, 64], sizes = [8, 32], strides = [1, 1]} : vector<8x128xf32> to vector<8x32xf32>
    %290 = vector.extract_strided_slice %285 {offsets = [0, 96], sizes = [8, 32], strides = [1, 1]} : vector<8x128xf32> to vector<8x32xf32>
    %291 = arith.mulf %288, %252 : vector<8x32xf32>
    %292 = arith.mulf %287, %289 : vector<8x32xf32>
    %293 = arith.addf %291, %292 : vector<8x32xf32>
    %294 = math.tanh %293 : vector<8x32xf32>
    %295 = arith.mulf %290, %294 : vector<8x32xf32>
    %296 = tpu.concatenate %295, %275 in 1 : vector<8x32xf32>, vector<8x32xf32> -> vector<8x64xf32>
    %cst_97 = arith.constant dense<0.000000e+00> : vector<8x256xf32>
    %297 = tpu.matmul %296, %66, %cst_97 {dimension_numbers = #tpu.dot_dimension_numbers<[1], [0], [0], [1], [0, 0, 1, 1], [], []>} : vector<8x64xf32>, vector<64x256xf32>, vector<8x256xf32> -> vector<8x256xf32>
    %298 = vector.extract_strided_slice %297 {offsets = [0, 128], sizes = [8, 128], strides = [1, 1]} : vector<8x256xf32> to vector<8x128xf32>
    %299 = arith.addf %298, %71 : vector<8x128xf32>
    %cst_98 = arith.constant 5.000000e-01 : f32
    %300 = vector.broadcast %cst_98 : f32 to vector<8x128xf32>
    %301 = arith.mulf %300, %299 : vector<8x128xf32>
    %302 = math.tanh %301 : vector<8x128xf32>
    %cst_99 = arith.constant 5.000000e-01 : f32
    %303 = vector.broadcast %cst_99 : f32 to vector<8x128xf32>
    %304 = arith.mulf %303, %302 : vector<8x128xf32>
    %cst_100 = arith.constant 5.000000e-01 : f32
    %305 = vector.broadcast %cst_100 : f32 to vector<8x128xf32>
    %306 = arith.addf %304, %305 : vector<8x128xf32>
    %307 = math.tanh %299 : vector<8x128xf32>
    %308 = vector.extract_strided_slice %306 {offsets = [0, 0], sizes = [8, 32], strides = [1, 1]} : vector<8x128xf32> to vector<8x32xf32>
    %309 = vector.extract_strided_slice %306 {offsets = [0, 32], sizes = [8, 32], strides = [1, 1]} : vector<8x128xf32> to vector<8x32xf32>
    %310 = vector.extract_strided_slice %307 {offsets = [0, 64], sizes = [8, 32], strides = [1, 1]} : vector<8x128xf32> to vector<8x32xf32>
    %311 = vector.extract_strided_slice %306 {offsets = [0, 96], sizes = [8, 32], strides = [1, 1]} : vector<8x128xf32> to vector<8x32xf32>
    %312 = arith.mulf %309, %273 : vector<8x32xf32>
    %313 = arith.mulf %308, %310 : vector<8x32xf32>
    %314 = arith.addf %312, %313 : vector<8x32xf32>
    %315 = math.tanh %314 : vector<8x32xf32>
    %316 = arith.mulf %311, %315 : vector<8x32xf32>
    %c48_101 = arith.constant 48 : index
    %c0_102 = arith.constant 0 : index
    %317 = vector.load %arg5[%c48_101, %c0_102] : memref<64x128xf32, #tpu.memory_space<vmem>>, vector<8x128xf32>
    %318 = vector.extract_strided_slice %297 {offsets = [0, 0], sizes = [8, 128], strides = [1, 1]} : vector<8x256xf32> to vector<8x128xf32>
    %319 = arith.addf %317, %318 : vector<8x128xf32>
    %cst_103 = arith.constant 5.000000e-01 : f32
    %320 = vector.broadcast %cst_103 : f32 to vector<8x128xf32>
    %321 = arith.mulf %320, %319 : vector<8x128xf32>
    %322 = math.tanh %321 : vector<8x128xf32>
    %cst_104 = arith.constant 5.000000e-01 : f32
    %323 = vector.broadcast %cst_104 : f32 to vector<8x128xf32>
    %324 = arith.mulf %323, %322 : vector<8x128xf32>
    %cst_105 = arith.constant 5.000000e-01 : f32
    %325 = vector.broadcast %cst_105 : f32 to vector<8x128xf32>
    %326 = arith.addf %324, %325 : vector<8x128xf32>
    %327 = math.tanh %319 : vector<8x128xf32>
    %328 = vector.extract_strided_slice %326 {offsets = [0, 0], sizes = [8, 32], strides = [1, 1]} : vector<8x128xf32> to vector<8x32xf32>
    %329 = vector.extract_strided_slice %326 {offsets = [0, 32], sizes = [8, 32], strides = [1, 1]} : vector<8x128xf32> to vector<8x32xf32>
    %330 = vector.extract_strided_slice %327 {offsets = [0, 64], sizes = [8, 32], strides = [1, 1]} : vector<8x128xf32> to vector<8x32xf32>
    %331 = vector.extract_strided_slice %326 {offsets = [0, 96], sizes = [8, 32], strides = [1, 1]} : vector<8x128xf32> to vector<8x32xf32>
    %332 = arith.mulf %329, %293 : vector<8x32xf32>
    %333 = arith.mulf %328, %330 : vector<8x32xf32>
    %334 = arith.addf %332, %333 : vector<8x32xf32>
    %335 = math.tanh %334 : vector<8x32xf32>
    %336 = arith.mulf %331, %335 : vector<8x32xf32>
    %337 = tpu.concatenate %336, %316 in 1 : vector<8x32xf32>, vector<8x32xf32> -> vector<8x64xf32>
    %cst_106 = arith.constant dense<0.000000e+00> : vector<8x256xf32>
    %338 = tpu.matmul %337, %66, %cst_106 {dimension_numbers = #tpu.dot_dimension_numbers<[1], [0], [0], [1], [0, 0, 1, 1], [], []>} : vector<8x64xf32>, vector<64x256xf32>, vector<8x256xf32> -> vector<8x256xf32>
    %339 = vector.extract_strided_slice %338 {offsets = [0, 128], sizes = [8, 128], strides = [1, 1]} : vector<8x256xf32> to vector<8x128xf32>
    %340 = arith.addf %339, %71 : vector<8x128xf32>
    %cst_107 = arith.constant 5.000000e-01 : f32
    %341 = vector.broadcast %cst_107 : f32 to vector<8x128xf32>
    %342 = arith.mulf %341, %340 : vector<8x128xf32>
    %343 = math.tanh %342 : vector<8x128xf32>
    %cst_108 = arith.constant 5.000000e-01 : f32
    %344 = vector.broadcast %cst_108 : f32 to vector<8x128xf32>
    %345 = arith.mulf %344, %343 : vector<8x128xf32>
    %cst_109 = arith.constant 5.000000e-01 : f32
    %346 = vector.broadcast %cst_109 : f32 to vector<8x128xf32>
    %347 = arith.addf %345, %346 : vector<8x128xf32>
    %348 = math.tanh %340 : vector<8x128xf32>
    %349 = vector.extract_strided_slice %347 {offsets = [0, 0], sizes = [8, 32], strides = [1, 1]} : vector<8x128xf32> to vector<8x32xf32>
    %350 = vector.extract_strided_slice %347 {offsets = [0, 32], sizes = [8, 32], strides = [1, 1]} : vector<8x128xf32> to vector<8x32xf32>
    %351 = vector.extract_strided_slice %348 {offsets = [0, 64], sizes = [8, 32], strides = [1, 1]} : vector<8x128xf32> to vector<8x32xf32>
    %352 = vector.extract_strided_slice %347 {offsets = [0, 96], sizes = [8, 32], strides = [1, 1]} : vector<8x128xf32> to vector<8x32xf32>
    %353 = arith.mulf %350, %314 : vector<8x32xf32>
    %354 = arith.mulf %349, %351 : vector<8x32xf32>
    %355 = arith.addf %353, %354 : vector<8x32xf32>
    %356 = math.tanh %355 : vector<8x32xf32>
    %357 = arith.mulf %352, %356 : vector<8x32xf32>
    %c56_110 = arith.constant 56 : index
    %c0_111 = arith.constant 0 : index
    %358 = vector.load %arg5[%c56_110, %c0_111] : memref<64x128xf32, #tpu.memory_space<vmem>>, vector<8x128xf32>
    %359 = vector.extract_strided_slice %338 {offsets = [0, 0], sizes = [8, 128], strides = [1, 1]} : vector<8x256xf32> to vector<8x128xf32>
    %360 = arith.addf %358, %359 : vector<8x128xf32>
    %cst_112 = arith.constant 5.000000e-01 : f32
    %361 = vector.broadcast %cst_112 : f32 to vector<8x128xf32>
    %362 = arith.mulf %361, %360 : vector<8x128xf32>
    %363 = math.tanh %362 : vector<8x128xf32>
    %cst_113 = arith.constant 5.000000e-01 : f32
    %364 = vector.broadcast %cst_113 : f32 to vector<8x128xf32>
    %365 = arith.mulf %364, %363 : vector<8x128xf32>
    %cst_114 = arith.constant 5.000000e-01 : f32
    %366 = vector.broadcast %cst_114 : f32 to vector<8x128xf32>
    %367 = arith.addf %365, %366 : vector<8x128xf32>
    %368 = math.tanh %360 : vector<8x128xf32>
    %369 = vector.extract_strided_slice %367 {offsets = [0, 0], sizes = [8, 32], strides = [1, 1]} : vector<8x128xf32> to vector<8x32xf32>
    %370 = vector.extract_strided_slice %367 {offsets = [0, 32], sizes = [8, 32], strides = [1, 1]} : vector<8x128xf32> to vector<8x32xf32>
    %371 = vector.extract_strided_slice %368 {offsets = [0, 64], sizes = [8, 32], strides = [1, 1]} : vector<8x128xf32> to vector<8x32xf32>
    %372 = vector.extract_strided_slice %367 {offsets = [0, 96], sizes = [8, 32], strides = [1, 1]} : vector<8x128xf32> to vector<8x32xf32>
    %373 = arith.mulf %370, %334 : vector<8x32xf32>
    %374 = arith.mulf %369, %371 : vector<8x32xf32>
    %375 = arith.addf %373, %374 : vector<8x32xf32>
    %376 = math.tanh %375 : vector<8x32xf32>
    %377 = arith.mulf %372, %376 : vector<8x32xf32>
    %378 = tpu.concatenate %377, %357 in 1 : vector<8x32xf32>, vector<8x32xf32> -> vector<8x64xf32>
    %cst_115 = arith.constant dense<0.000000e+00> : vector<8x256xf32>
    %379 = tpu.matmul %378, %66, %cst_115 {dimension_numbers = #tpu.dot_dimension_numbers<[1], [0], [0], [1], [0, 0, 1, 1], [], []>} : vector<8x64xf32>, vector<64x256xf32>, vector<8x256xf32> -> vector<8x256xf32>
    %380 = vector.extract_strided_slice %379 {offsets = [0, 128], sizes = [8, 128], strides = [1, 1]} : vector<8x256xf32> to vector<8x128xf32>
    %381 = arith.addf %380, %71 : vector<8x128xf32>
    %cst_116 = arith.constant 5.000000e-01 : f32
    %382 = vector.broadcast %cst_116 : f32 to vector<8x128xf32>
    %383 = arith.mulf %382, %381 : vector<8x128xf32>
    %384 = math.tanh %383 : vector<8x128xf32>
    %cst_117 = arith.constant 5.000000e-01 : f32
    %385 = vector.broadcast %cst_117 : f32 to vector<8x128xf32>
    %386 = arith.mulf %385, %384 : vector<8x128xf32>
    %cst_118 = arith.constant 5.000000e-01 : f32
    %387 = vector.broadcast %cst_118 : f32 to vector<8x128xf32>
    %388 = arith.addf %386, %387 : vector<8x128xf32>
    %389 = math.tanh %381 : vector<8x128xf32>
    %390 = vector.extract_strided_slice %388 {offsets = [0, 0], sizes = [8, 32], strides = [1, 1]} : vector<8x128xf32> to vector<8x32xf32>
    %391 = vector.extract_strided_slice %388 {offsets = [0, 32], sizes = [8, 32], strides = [1, 1]} : vector<8x128xf32> to vector<8x32xf32>
    %392 = vector.extract_strided_slice %389 {offsets = [0, 64], sizes = [8, 32], strides = [1, 1]} : vector<8x128xf32> to vector<8x32xf32>
    %393 = vector.extract_strided_slice %388 {offsets = [0, 96], sizes = [8, 32], strides = [1, 1]} : vector<8x128xf32> to vector<8x32xf32>
    %394 = arith.mulf %391, %355 : vector<8x32xf32>
    %395 = arith.mulf %390, %392 : vector<8x32xf32>
    %396 = arith.addf %394, %395 : vector<8x32xf32>
    %397 = math.tanh %396 : vector<8x32xf32>
    %398 = arith.mulf %393, %397 : vector<8x32xf32>
    %cst_119 = arith.constant dense<0.000000e+00> : vector<8x128xf32>
    %399 = tpu.matmul %398, %67, %cst_119 {dimension_numbers = #tpu.dot_dimension_numbers<[1], [0], [0], [1], [0, 0, 1, 1], [], []>} : vector<8x32xf32>, vector<32x128xf32>, vector<8x128xf32> -> vector<8x128xf32>
    %400 = vector.broadcast %68 : vector<1x128xf32> to vector<8x128xf32>
    %401 = arith.addf %399, %400 : vector<8x128xf32>
    %c0_120 = arith.constant 0 : index
    %c0_121 = arith.constant 0 : index
    %402 = vector.load %arg4[%c0_120, %c0_121] : memref<8x128xf32, #tpu.memory_space<vmem>>, vector<8x128xf32>
    tpu.vector_store %arg4[%c0_120, %c0_121], %401 {strides = array<i32>} : memref<8x128xf32, #tpu.memory_space<vmem>>, vector<8x128xf32>,
    return
  }
}

</mosaic_0001>

<bundles_post_ra>
// kernel: lstm_classifier_forward.1
= control target key start
LH: loop header
LB: loop body
LE: loop exit
PB: predicated region body
PF: predicated region fallthrough
CT: control target
= control target key end

     0   :  { %9 = vsyncpa [#allocation5], 0  ;;  %s1973_s0 = inlined_call_operand.vmem [shape: s32[16], index: 0, kind: input, shape index: {}]   ;;  %s1974_s1 = inlined_call_operand.hbm [shape: f32[56,128], index: 1, kind: input, shape index: {}]   ;;  %s1975_s2 = inlined_call_operand.hbm [shape: f32[64,256], index: 2, kind: input, shape index: {}]   ;;  %s1976_s3 = inlined_call_operand.hbm [shape: f32[40,128], index: 3, kind: input, shape index: {}]   ;;  %s1977_s4 = inlined_call_operand.vmem [shape: f32[8,128], index: 4, kind: output, shape index: {}]  }
   0x1   :  { %10 = vsyncpa [#allocation4], 0 }
   0x2   :  { %11 = vsyncpa [#allocation8], 0  ;;  %s1677_s15 = smov [#allocation7]   ;;  %s18_s19 = sshll.u32 %s1973_s0, 4  ;;  %s19_s19 = int_to_ptr.vmem [resolvable:$true] %s18_s19 }
   0x3   :  { %s39_s16 = sshll.u32 %s1677_s15, 4  ;;  %s1593_s22 = scalar_lea.hbm %s1975_s2, 2048  ;;  %s40_s16 = int_to_ptr.vmem [resolvable:$true] %s39_s16 }
   0x4   :  { %p1594_p0 = scmp.ne.s32.totalorder %s1975_s2, %s1593_s22  ;;  %p1597_p1 = scmp.lt.u32.totalorder %s1593_s22, %s1975_s2 }
   0x6   :  { %p1599_p2 = pnand %p1597_p1, %p1594_p0 }
   0x8   :  { %1602 = shalt.err (!%p1599_p2)
}
   0x9   :  { %s1603_s27 = scalar_lea.vmem %s40_s16, 2048  ;;  %p1608_p4 = scmp.lt.s32.totalorder %s40_s16, %s40_s16 }
   0xa   :  { %p1604_p3 = scmp.ne.s32.totalorder %s40_s16, %s1603_s27  ;;  %p1609_p5 = scmp.lt.s32.totalorder %s1603_s27, %s1603_s27 }
   0xc   :  { %p1610_p6 = por %p1609_p5, %p1608_p4 }
   0xe   :  { %p1611_p7 = pnand %p1610_p6, %p1604_p3 }
  0x10   :  { %1614 = shalt.err (!%p1611_p7)
}
  0x11   :  { %s1678_s0 = smov 256   ;;  %s1679_s28 = smov 16  }
  0x12   :  { %45 = dma.hbm_to_vmem [thread:$0]  %s1975_s2, 2048, %s40_s16, [#allocation8], %s1678_s0, %s1678_s0, %s1679_s28  }
  0x13   :  { %s1615_s5 = scalar_lea.vmem %s19_s19, 16  ;;  %p1620_p9 = scmp.lt.s32.totalorder %s19_s19, %s19_s19 }
  0x14   :  { %p1616_p8 = scmp.ne.s32.totalorder %s19_s19, %s1615_s5  ;;  %p1621_p10 = scmp.lt.s32.totalorder %s1615_s5, %s1615_s5 }
  0x16   :  { %p1622_p11 = por %p1621_p10, %p1620_p9 }
  0x18   :  { %p1623_p12 = pnand %p1622_p11, %p1616_p8 }
  0x1a   :  { %1626 = shalt.err (!%p1623_p12)
}
  0x1b   :  { %s1680_s6 = smov [#allocation3]   ;;  %s1681_s7 = smov [#allocation6]  }
  0x1c   :  { %21 = dma.vmem_to_smem %s19_s19, 16, %s1680_s6, [#allocation5]  }
  0x1d   :  { %s27_s8 = sshll.u32 %s1681_s7, 4  ;;  %s1627_s11 = scalar_lea.hbm %s1974_s1, 896  ;;  %s28_s8 = int_to_ptr.vmem [resolvable:$true] %s27_s8 }
  0x1e   :  { %p1628_p13 = scmp.ne.s32.totalorder %s1974_s1, %s1627_s11  ;;  %p1631_p0 = scmp.lt.u32.totalorder %s1627_s11, %s1974_s1 }
  0x20   :  { %p1633_p1 = pnand %p1631_p0, %p1628_p13 }
  0x22   :  { %1636 = shalt.err (!%p1633_p1)
}
  0x23   :  { %s1637_s15 = scalar_lea.vmem %s28_s8, 896  ;;  %p1642_p3 = scmp.lt.s32.totalorder %s28_s8, %s28_s8 }
  0x24   :  { %p1638_p2 = scmp.ne.s32.totalorder %s28_s8, %s1637_s15  ;;  %p1643_p4 = scmp.lt.s32.totalorder %s1637_s15, %s1637_s15 }
  0x26   :  { %p1644_p5 = por %p1643_p4, %p1642_p3 }
  0x28   :  { %p1645_p6 = pnand %p1644_p5, %p1638_p2 }
  0x2a   :  { %1648 = shalt.err (!%p1645_p6)
}
  0x2b   :  { %s1682_s16 = smov 128   ;;  %s1683_s17 = smov 8  }
  0x2c   :  { %33 = dma.hbm_to_vmem [thread:$0]  %s1974_s1, 896, %s28_s8, [#allocation4], %s1682_s16, %s1682_s16, %s1683_s17  }
  0x2d   :  { %s1684_s20 = smov [#allocation9]   ;;  %s1649_s24 = scalar_lea.hbm %s1976_s3, 640 }
  0x2e   :  { %s51_s21 = sshll.u32 %s1684_s20, 4  ;;  %p1650_p7 = scmp.ne.s32.totalorder %s1976_s3, %s1649_s24  ;;  %s52_s21 = int_to_ptr.vmem [resolvable:$true] %s51_s21 }
  0x2f   :  { %p1653_p8 = scmp.lt.u32.totalorder %s1649_s24, %s1976_s3 }
  0x31   :  { %p1655_p9 = pnand %p1653_p8, %p1650_p7 }
  0x33   :  { %1658 = shalt.err (!%p1655_p9)
}
  0x34   :  { %s1659_s28 = scalar_lea.vmem %s52_s21, 640  ;;  %p1664_p11 = scmp.lt.s32.totalorder %s52_s21, %s52_s21 }
  0x35   :  { %p1660_p10 = scmp.ne.s32.totalorder %s52_s21, %s1659_s28  ;;  %p1665_p12 = scmp.lt.s32.totalorder %s1659_s28, %s1659_s28 }
  0x37   :  { %p1666_p13 = por %p1665_p12, %p1664_p11 }
  0x39   :  { %p1667_p0 = pnand %p1666_p13, %p1660_p10 }
  0x3b   :  { %1670 = shalt.err (!%p1667_p0)
}
  0x3c   :  { %57 = dma.hbm_to_vmem [thread:$0]  %s1976_s3, 640, %s52_s21, [#allocation8], %s1682_s16, %s1682_s16, %s1683_s17  }
  0x3d   :  { %1671 = dma.done.wait [#allocation5], 16  }
  0x3e   :  { %1672 = vsyncadd [#allocation5], 4294967280 }
  0x3f   :  { %1673 = dma.done.wait [#allocation4], 896  }
  0x40   :  { %1674 = vsyncadd [#allocation4], 4294966400 }
  0x41   :  { %1675 = dma.done.wait [#allocation8], 2688  }
  0x42   :  { %1676 = vsyncadd [#allocation8], 4294964608 }
  0x43   :  { %70 = sfence }
  0x44   :  { %s79_s30 = sld [smem:[#allocation3]]  ;;  %v1685_v0 = vmov 0.0   ;;  %s1686_s7 = smov 64   ;;  %v144_v14 = vld [vmem:[#allocation7 + $0x8] sm:$0xff]  ;;  %v146_v15 = vld [vmem:[#allocation7 + $0x18] sm:$0xff]  ;;  %v143_v16 = vld [vmem:[#allocation7] sm:$0xff] }
  0x45   :  { %s1308_s5 = sld [smem:[#allocation3 + $0x8]]  ;;  %71 = vst [vmem:[#allocation2] sm:$0xff] %v1685_v0  ;;  %72 = vst [vmem:[#allocation2 + $0x8] sm:$0xff] %v1685_v0  ;;  %266 = vmatprep.mubr.f32.mxu0 %v1685_v0  ;;  %396 = vmatprep.mubr.f32.mxu1 %v1685_v0  ;;  %s1687_s8 = smov 32   ;;  %v1769_v17 = vpack.c.bf16 %v146_v15, %v144_v14  ;;  %v145_v18 = vld [vmem:[#allocation7 + $0x10] sm:$0xff]  ;;  %v148_v19 = vld [vmem:[#allocation7 + $0x28] sm:$0xff] }
  0x46   :  { %73 = vst [vmem:[#allocation2 + $0x10] sm:$0xff] %v1685_v0  ;;  %74 = vst [vmem:[#allocation2 + $0x18] sm:$0xff] %v1685_v0  ;;  %v150_v20 = vld [vmem:[#allocation7 + $0x38] sm:$0xff]  ;;  %v1771_v21 = vpack.c.bf16 %v145_v18, %v143_v16  ;;  %v147_v23 = vld [vmem:[#allocation7 + $0x20] sm:$0xff]  ;;  %s1309_s9 = sld [smem:[#allocation3 + $0x1]]  ;;  %vm196_vm0 = vcmask 261120  }
  0x47   :  { %75 = vst [vmem:[#allocation2 + $0x20] sm:$0xff] %v1685_v0  ;;  %76 = vst [vmem:[#allocation2 + $0x28] sm:$0xff] %v1685_v0  ;;  %v1773_v22 = vpack.c.bf16 %v150_v20, %v148_v19  ;;  %v149_v24 = vld [vmem:[#allocation7 + $0x30] sm:$0xff]  ;;  %v152_v25 = vld [vmem:[#allocation7 + $0x48] sm:$0xff]  ;;  %1351 = vmatprep.subr.bf16.mxu0 %v1769_v17  ;;  %1367 = vmatprep.subr.bf16.mxu1 %v1769_v17  ;;  %s1310_s10 = sld [smem:[#allocation3 + $0x9]]  ;;  %vm198_vm1 = vcmask 523264  }
  0x48   :  { %77 = vst [vmem:[#allocation2 + $0x30] sm:$0xff] %v1685_v0  ;;  %78 = vst [vmem:[#allocation2 + $0x38] sm:$0xff] %v1685_v0  ;;  %v154_v26 = vld [vmem:[#allocation7 + $0x58] sm:$0xff]  ;;  %1353 = vmatpush1.bf16.msra.mxu0 %v1771_v21  ;;  %v1778_v27 = vpack.c.bf16 %v149_v24, %v147_v23  ;;  %1369 = vmatpush1.bf16.msra.mxu1 %v1771_v21  ;;  %v151_v29 = vld [vmem:[#allocation7 + $0x40] sm:$0xff]  ;;  %s1311_s13 = sld [smem:[#allocation3 + $0x2]]  ;;  %s1313_s16 = sld [smem:[#allocation3 + $0x3]] }
  0x49   :  { %1355 = vmatprep.subr.bf16.mxu0 %v1773_v22  ;;  %v1782_v28 = vpack.c.bf16 %v154_v26, %v152_v25  ;;  %v153_v30 = vld [vmem:[#allocation7 + $0x50] sm:$0xff]  ;;  %1371 = vmatprep.subr.bf16.mxu1 %v1773_v22  ;;  %v156_v31 = vld [vmem:[#allocation7 + $0x68] sm:$0xff]  ;;  %v158_v32 = vld [vmem:[#allocation7 + $0x78] sm:$0xff]  ;;  %s1312_s2 = sld [smem:[#allocation3 + $0xa]]  ;;  %s1314_s17 = sld [smem:[#allocation3 + $0xb]]  ;;  %vm1689_vm2 = vmmov 0  }
  0x4a   :  { %s80_s3 = scalar_lea.vmem [#allocation6], %s79_s30  ;;  %v1786_v33 = vpack.c.bf16 %v153_v30, %v151_v29  ;;  %v1790_v34 = vpack.c.bf16 %v158_v32, %v156_v31  ;;  %v155_v35 = vld [vmem:[#allocation7 + $0x60] sm:$0xff]  ;;  %v157_v36 = vld [vmem:[#allocation7 + $0x70] sm:$0xff]  ;;  %s1315_s20 = sld [smem:[#allocation3 + $0x4]] }
  0x4b   :  { %v81_v1 = vld [vmem:[%s80_s3] sm:$0x1]  ;;  %s84_s6 = scalar_lea.vmem [#allocation6], %s1308_s5  ;;  %v1795_v38 = vpack.c.bf16 %v157_v36, %v155_v35  ;;  %v1816_v46 = vld [vmem:[#allocation9 + $0x21] ss:$0 sm:$0xff]  ;;  %s1316_s21 = sld [smem:[#allocation3 + $0xc]] }
  0x4c   :  { %v85_v2 = vld [vmem:[%s84_s6] sm:$0x1]  ;;  %82 = vst [vmem:[#allocation2] sm:$0x1] %v81_v1  ;;  %1357 = vmatpush1.bf16.msra.mxu0 %v1778_v27  ;;  %1373 = vmatpush1.bf16.msra.mxu1 %v1778_v27  ;;  %s88_s11 = scalar_lea.vmem [#allocation6], %s1309_s9  ;;  %s1317_s24 = sld [smem:[#allocation3 + $0x5]] }
  0x4d   :  { %86 = vst [vmem:[#allocation2 + $0x1] sm:$0x1] %v85_v2  ;;  %1359 = vmatprep.subr.bf16.mxu0 %v1782_v28  ;;  %1375 = vmatprep.subr.bf16.mxu1 %v1782_v28  ;;  %v89_v39 = vld [vmem:[%s88_s11] sm:$0x1]  ;;  %s92_s12 = scalar_lea.vmem [#allocation6], %s1310_s10  ;;  %s1318_s25 = sld [smem:[#allocation3 + $0xd]] }
  0x4e   :  { %v93_v40 = vld [vmem:[%s92_s12] sm:$0x1]  ;;  %90 = vst [vmem:[#allocation2 + $0x8] sm:$0x1] %v89_v39  ;;  %s96_s14 = scalar_lea.vmem [#allocation6], %s1311_s13  ;;  %s104_s18 = scalar_lea.vmem [#allocation6], %s1313_s16 }
  0x4f   :  { %94 = vst [vmem:[#allocation2 + $0x9] sm:$0x1] %v93_v40  ;;  %s100_s15 = scalar_lea.vmem [#allocation6], %s1312_s2  ;;  %s108_s19 = scalar_lea.vmem [#allocation6], %s1314_s17 }
  0x50   :  { %1361 = vmatpush1.bf16.msra.mxu0 %v1786_v33  ;;  %1377 = vmatpush1.bf16.msra.mxu1 %v1786_v33  ;;  %s112_s22 = scalar_lea.vmem [#allocation6], %s1315_s20  ;;  %s1319_s0 = sld [smem:[#allocation3 + $0x6]] }
  0x51   :  { %1363 = vmatprep.subr.bf16.mxu0 %v1790_v34  ;;  %1379 = vmatprep.subr.bf16.mxu1 %v1790_v34  ;;  %s116_s23 = scalar_lea.vmem [#allocation6], %s1316_s21  ;;  %s1320_s28 = sld [smem:[#allocation3 + $0xe]] }
  0x52   :  { %s120_s26 = scalar_lea.vmem [#allocation6], %s1317_s24  ;;  %s1321_s30 = sld [smem:[#allocation3 + $0x7]] }
  0x53   :  { %s124_s27 = scalar_lea.vmem [#allocation6], %s1318_s25  ;;  %s1322_s5 = sld [smem:[#allocation3 + $0xf]] }
  0x54   :  { %v169_v3 = vld [vmem:[#allocation2] sm:$0xff]  ;;  %1365 = vmatpush1.bf16.msra.mxu0 %v1795_v38  ;;  %1381 = vmatpush1.bf16.msra.mxu1 %v1795_v38 }
  0x55   :  { %1497 = vtanh.f32 %v169_v3  ;;  %v170_v5 = vmul.f32 0.5, %v169_v3  ;;  %1383 = vmatprep.subr.bf16.mxu0 %v1769_v17  ;;  %1399 = vmatprep.subr.bf16.mxu1 %v1769_v17 }
  0x56   :  { %v296_v45 = vld [vmem:[#allocation2 + $0x8] sm:$0xff]  ;;  %s128_s1 = scalar_lea.vmem [#allocation6], %s1319_s0 }
  0x57   :  { %1499 = vtanh.f32 %v170_v5  ;;  %s132_s29 = scalar_lea.vmem [#allocation6], %s1320_s28 }
  0x58   :  { %s136_s3 = scalar_lea.vmem [#allocation6], %s1321_s30 }
  0x59   :  { %s140_s6 = scalar_lea.vmem [#allocation6], %s1322_s5 }
  0x5f   :  { %v1498_v4 = vpop.eup %1497 }
  0x60   :  { %177 = vrot.lane.b32.xlu0 %v1498_v4, %s1686_s7 }
  0x61   :  { %v1500_v6 = vpop.eup %1499 }
  0x62   :  { %v172_v7 = vmul.f32 0.5, %v1500_v6 }
  0x64   :  { %v173_v8 = vadd.f32 0.5, %v172_v7 }
  0x66   :  { %v175_v11 = vmul.f32 0.0, %v173_v8 }
  0xd2   :  { %v178_v9 = vpop.permute.xlu0 %177 }
  0xd3   :  { %v180_v10 = vmul.f32 %v178_v9, %v173_v8 }
  0xd5   :  { %182 = vrot.lane.b32.xlu0 %v180_v10, %s1687_s8  ;;  %v97_v10 = vld [vmem:[%s96_s14] sm:$0x1] }
  0xd6   :  { %98 = vst [vmem:[#allocation2 + $0x10] sm:$0x1] %v97_v10 }
 0x147   :  { %v183_v12 = vpop.permute.xlu0 %182 }
 0x148   :  { %v1766_v13 = vadd.f32 %v183_v12, %v175_v11  ;;  %v101_v11 = vld [vmem:[%s100_s15] sm:$0x1] }
 0x149   :  { %102 = vst [vmem:[#allocation2 + $0x11] sm:$0x1] %v101_v11 }
 0x14a   :  { %1501 = vtanh.f32 %v1766_v13 }
 0x150   :  { %v426_v20 = vld [vmem:[#allocation2 + $0x10] sm:$0xff] }
 0x154   :  { %v1502_v37 = vpop.eup %1501 }
 0x155   :  { %188 = vrot.lane.b32.xlu1 %v1502_v37, %s1686_s7 }
 0x1c7   :  { %v189_v41 = vpop.permute.xlu1 %188 }
 0x1c8   :  { %v191_v42 = vmul.f32 %v189_v41, %v173_v8 }
 0x1ca   :  { %193 = vrot.lane.b32.xlu1 %v191_v42, %s1687_s8 }
 0x23c   :  { %v194_v43 = vpop.permute.xlu1 %193 }
 0x23d   :  { %v197_v44 = vsel %vm196_vm0, %v194_v43, 0.0 }
 0x23e   :  { %1324 = vmatmul.mubr.msk.f32.vlgmr.msra.gmra.mrb[0].mxu0 %vm198_vm1, %v197_v44 }
 0x23f   :  { %1385 = vmatpush1.bf16.msra.mxu0 %v1771_v21  ;;  %526 = vmatprep.mubr.f32.mxu0 %v1685_v0 }
 0x240   :  { %1387 = vmatprep.subr.bf16.mxu0 %v1773_v22 }
 0x243   :  { %1389 = vmatpush1.bf16.msra.mxu0 %v1778_v27 }
 0x244   :  { %1391 = vmatprep.subr.bf16.mxu0 %v1782_v28 }
 0x247   :  { %1393 = vmatpush1.bf16.msra.mxu0 %v1786_v33 }
 0x248   :  { %1395 = vmatprep.subr.bf16.mxu0 %v1790_v34 }
 0x24b   :  { %1397 = vmatpush1.bf16.msra.mxu0 %v1795_v38 }
 0x24c   :  { %1415 = vmatprep.subr.bf16.mxu0 %v1769_v17 }
 0x311   :  { %v268_v47 = vpop.f32.mrb[0].mxu0 }
 0x312   :  { %v297_v48 = vadd.f32 %v296_v45, %v268_v47  ;;  %v270_v49 = vpop.f32.mrb[1].mxu0 }
 0x313   :  { %v273_v50 = vadd.f32 %v1816_v46, %v270_v49 }
 0x314   :  { %1503 = vtanh.f32 %v297_v48  ;;  %v298_v53 = vmul.f32 0.5, %v297_v48 }
 0x315   :  { %1505 = vtanh.f32 %v273_v50  ;;  %v274_v54 = vmul.f32 0.5, %v273_v50 }
 0x316   :  { %1507 = vtanh.f32 %v298_v53 }
 0x317   :  { %1509 = vtanh.f32 %v274_v54 }
 0x31e   :  { %v1504_v51 = vpop.eup %1503 }
 0x31f   :  { %v1506_v52 = vpop.eup %1505  ;;  %305 = vrot.lane.b32.xlu1 %v1504_v51, %s1686_s7 }
 0x320   :  { %281 = vrot.lane.b32.xlu0 %v1506_v52, %s1686_s7  ;;  %v1508_v55 = vpop.eup %1507 }
 0x321   :  { %v1510_v56 = vpop.eup %1509  ;;  %v300_v57 = vmul.f32 0.5, %v1508_v55  ;;  %v105_v55 = vld [vmem:[%s104_s18] sm:$0x1] }
 0x322   :  { %v276_v58 = vmul.f32 0.5, %v1510_v56  ;;  %v109_v56 = vld [vmem:[%s108_s19] sm:$0x1]  ;;  %106 = vst [vmem:[#allocation2 + $0x18] sm:$0x1] %v105_v55 }
 0x323   :  { %v301_v59 = vadd.f32 0.5, %v300_v57  ;;  %110 = vst [vmem:[#allocation2 + $0x19] sm:$0x1] %v109_v56 }
 0x324   :  { %v277_v61 = vadd.f32 0.5, %v276_v58 }
 0x325   :  { %v303_v2 = vmul.f32 %v301_v59, %v1766_v13 }
 0x326   :  { %v279_v4 = vmul.f32 0.0, %v277_v61 }
 0x391   :  { %v306_v60 = vpop.permute.xlu1 %305 }
 0x392   :  { %v308_v62 = vmul.f32 %v306_v60, %v301_v59  ;;  %v282_v63 = vpop.permute.xlu0 %281 }
 0x393   :  { %v284_v1 = vmul.f32 %v282_v63, %v277_v61 }
 0x394   :  { %310 = vrot.lane.b32.xlu1 %v308_v62, %s1687_s8 }
 0x395   :  { %286 = vrot.lane.b32.xlu0 %v284_v1, %s1687_s8  ;;  %v556_v1 = vld [vmem:[#allocation2 + $0x18] sm:$0xff] }
 0x406   :  { %v311_v3 = vpop.permute.xlu1 %310 }
 0x407   :  { %v1824_v5 = vadd.f32 %v311_v3, %v303_v2  ;;  %v287_v6 = vpop.permute.xlu0 %286 }
 0x408   :  { %v1826_v7 = vadd.f32 %v287_v6, %v279_v4 }
 0x409   :  { %1511 = vtanh.f32 %v1824_v5 }
 0x40a   :  { %1513 = vtanh.f32 %v1826_v7 }
 0x413   :  { %v1512_v8 = vpop.eup %1511 }
 0x414   :  { %v1514_v9 = vpop.eup %1513  ;;  %316 = vrot.lane.b32.xlu1 %v1512_v8, %s1686_s7 }
 0x415   :  { %292 = vrot.lane.b32.xlu0 %v1514_v9, %s1686_s7 }
 0x486   :  { %v317_v12 = vpop.permute.xlu1 %316 }
 0x487   :  { %v319_v13 = vmul.f32 %v317_v12, %v301_v59  ;;  %v293_v14 = vpop.permute.xlu0 %292 }
 0x488   :  { %v295_v15 = vmul.f32 %v293_v14, %v277_v61 }
 0x489   :  { %321 = vrot.lane.b32.xlu0 %v319_v13, %s1687_s8 }
 0x48a   :  { %325 = vrot.lane.b32.xlu1 %v295_v15, %s1686_s7 }
 0x4fb   :  { %v322_v16 = vpop.permute.xlu0 %321 }
 0x4fc   :  { %v326_v18 = vpop.permute.xlu1 %325 }
 0x4fd   :  { %v328_v19 = vsel %vm196_vm0, %v322_v16, %v326_v18 }
 0x4fe   :  { %1325 = vmatmul.mubr.msk.f32.vlgmr.msra.gmra.mrb[0].mxu1 %vm198_vm1, %v328_v19 }
 0x4ff   :  { %1401 = vmatpush1.bf16.msra.mxu1 %v1771_v21  ;;  %656 = vmatprep.mubr.f32.mxu1 %v1685_v0 }
 0x500   :  { %1403 = vmatprep.subr.bf16.mxu1 %v1773_v22 }
 0x503   :  { %1405 = vmatpush1.bf16.msra.mxu1 %v1778_v27 }
 0x504   :  { %1407 = vmatprep.subr.bf16.mxu1 %v1782_v28 }
 0x507   :  { %1409 = vmatpush1.bf16.msra.mxu1 %v1786_v33 }
 0x508   :  { %1411 = vmatprep.subr.bf16.mxu1 %v1790_v34 }
 0x50b   :  { %1413 = vmatpush1.bf16.msra.mxu1 %v1795_v38 }
 0x50c   :  { %1431 = vmatprep.subr.bf16.mxu1 %v1769_v17 }
 0x5d1   :  { %v398_v23 = vpop.f32.mrb[0].mxu1 }
 0x5d2   :  { %v427_v24 = vadd.f32 %v426_v20, %v398_v23  ;;  %v400_v25 = vpop.f32.mrb[1].mxu1 }
 0x5d3   :  { %v403_v26 = vadd.f32 %v1816_v46, %v400_v25 }
 0x5d4   :  { %1515 = vtanh.f32 %v427_v24  ;;  %v428_v31 = vmul.f32 0.5, %v427_v24 }
 0x5d5   :  { %1517 = vtanh.f32 %v403_v26  ;;  %v404_v32 = vmul.f32 0.5, %v403_v26 }
 0x5d6   :  { %1519 = vtanh.f32 %v428_v31 }
 0x5d7   :  { %1521 = vtanh.f32 %v404_v32 }
 0x5de   :  { %v1516_v29 = vpop.eup %1515 }
 0x5df   :  { %v1518_v30 = vpop.eup %1517  ;;  %435 = vrot.lane.b32.xlu1 %v1516_v29, %s1686_s7 }
 0x5e0   :  { %411 = vrot.lane.b32.xlu0 %v1518_v30, %s1686_s7  ;;  %v1520_v35 = vpop.eup %1519 }
 0x5e1   :  { %v1522_v36 = vpop.eup %1521  ;;  %v430_v37 = vmul.f32 0.5, %v1520_v35  ;;  %v113_v35 = vld [vmem:[%s112_s22] sm:$0x1] }
 0x5e2   :  { %v406_v39 = vmul.f32 0.5, %v1522_v36  ;;  %v117_v36 = vld [vmem:[%s116_s23] sm:$0x1]  ;;  %114 = vst [vmem:[#allocation2 + $0x20] sm:$0x1] %v113_v35 }
 0x5e3   :  { %v431_v40 = vadd.f32 0.5, %v430_v37  ;;  %118 = vst [vmem:[#allocation2 + $0x21] sm:$0x1] %v117_v36 }
 0x5e4   :  { %v407_v42 = vadd.f32 0.5, %v406_v39 }
 0x5e5   :  { %v433_v47 = vmul.f32 %v431_v40, %v1824_v5 }
 0x5e6   :  { %v409_v49 = vmul.f32 %v407_v42, %v1826_v7 }
 0x651   :  { %v436_v41 = vpop.permute.xlu1 %435 }
 0x652   :  { %v438_v43 = vmul.f32 %v436_v41, %v431_v40  ;;  %v412_v44 = vpop.permute.xlu0 %411 }
 0x653   :  { %v414_v45 = vmul.f32 %v412_v44, %v407_v42 }
 0x654   :  { %440 = vrot.lane.b32.xlu1 %v438_v43, %s1687_s8 }
 0x655   :  { %416 = vrot.lane.b32.xlu0 %v414_v45, %s1687_s8  ;;  %v686_v45 = vld [vmem:[#allocation2 + $0x20] sm:$0xff] }
 0x6c6   :  { %v441_v48 = vpop.permute.xlu1 %440 }
 0x6c7   :  { %v1852_v50 = vadd.f32 %v441_v48, %v433_v47  ;;  %v417_v51 = vpop.permute.xlu0 %416 }
 0x6c8   :  { %v1854_v52 = vadd.f32 %v417_v51, %v409_v49 }
 0x6c9   :  { %1523 = vtanh.f32 %v1852_v50 }
 0x6ca   :  { %1525 = vtanh.f32 %v1854_v52 }
 0x6d3   :  { %v1524_v53 = vpop.eup %1523 }
 0x6d4   :  { %v1526_v54 = vpop.eup %1525  ;;  %446 = vrot.lane.b32.xlu1 %v1524_v53, %s1686_s7 }
 0x6d5   :  { %422 = vrot.lane.b32.xlu0 %v1526_v54, %s1686_s7 }
 0x746   :  { %v447_v57 = vpop.permute.xlu1 %446 }
 0x747   :  { %v449_v58 = vmul.f32 %v447_v57, %v431_v40  ;;  %v423_v59 = vpop.permute.xlu0 %422 }
 0x748   :  { %v425_v60 = vmul.f32 %v423_v59, %v407_v42 }
 0x749   :  { %451 = vrot.lane.b32.xlu0 %v449_v58, %s1687_s8 }
 0x74a   :  { %455 = vrot.lane.b32.xlu1 %v425_v60, %s1686_s7 }
 0x7bb   :  { %v452_v61 = vpop.permute.xlu0 %451 }
 0x7bc   :  { %v456_v62 = vpop.permute.xlu1 %455 }
 0x7bd   :  { %v458_v63 = vsel %vm196_vm0, %v452_v61, %v456_v62 }
 0x7be   :  { %1326 = vmatmul.mubr.msk.f32.vlgmr.msra.gmra.mrb[2].mxu0 %vm198_vm1, %v458_v63 }
 0x7bf   :  { %1417 = vmatpush1.bf16.msra.mxu0 %v1771_v21  ;;  %786 = vmatprep.mubr.f32.mxu0 %v1685_v0 }
 0x7c0   :  { %1419 = vmatprep.subr.bf16.mxu0 %v1773_v22 }
 0x7c3   :  { %1421 = vmatpush1.bf16.msra.mxu0 %v1778_v27 }
 0x7c4   :  { %1423 = vmatprep.subr.bf16.mxu0 %v1782_v28 }
 0x7c7   :  { %1425 = vmatpush1.bf16.msra.mxu0 %v1786_v33 }
 0x7c8   :  { %1427 = vmatprep.subr.bf16.mxu0 %v1790_v34 }
 0x7cb   :  { %1429 = vmatpush1.bf16.msra.mxu0 %v1795_v38 }
 0x7cc   :  { %1447 = vmatprep.subr.bf16.mxu0 %v1769_v17 }
 0x891   :  { %v528_v2 = vpop.f32.mrb[2].mxu0 }
 0x892   :  { %v557_v3 = vadd.f32 %v556_v1, %v528_v2  ;;  %v530_v4 = vpop.f32.mrb[3].mxu0 }
 0x893   :  { %v533_v5 = vadd.f32 %v1816_v46, %v530_v4 }
 0x894   :  { %1527 = vtanh.f32 %v557_v3  ;;  %v558_v8 = vmul.f32 0.5, %v557_v3 }
 0x895   :  { %1529 = vtanh.f32 %v533_v5  ;;  %v534_v9 = vmul.f32 0.5, %v533_v5 }
 0x896   :  { %1531 = vtanh.f32 %v558_v8 }
 0x897   :  { %1533 = vtanh.f32 %v534_v9  ;;  %v121_v9 = vld [vmem:[%s120_s26] sm:$0x1] }
 0x898   :  { %122 = vst [vmem:[#allocation2 + $0x28] sm:$0x1] %v121_v9 }
 0x89e   :  { %v1528_v6 = vpop.eup %1527 }
 0x89f   :  { %v1530_v7 = vpop.eup %1529  ;;  %565 = vrot.lane.b32.xlu1 %v1528_v6, %s1686_s7 }
 0x8a0   :  { %541 = vrot.lane.b32.xlu0 %v1530_v7, %s1686_s7  ;;  %v1532_v10 = vpop.eup %1531 }
 0x8a1   :  { %v1534_v11 = vpop.eup %1533  ;;  %v560_v12 = vmul.f32 0.5, %v1532_v10  ;;  %v125_v10 = vld [vmem:[%s124_s27] sm:$0x1] }
 0x8a2   :  { %v536_v13 = vmul.f32 0.5, %v1534_v11  ;;  %126 = vst [vmem:[#allocation2 + $0x29] sm:$0x1] %v125_v10 }
 0x8a3   :  { %v561_v14 = vadd.f32 0.5, %v560_v12 }
 0x8a4   :  { %v537_v16 = vadd.f32 0.5, %v536_v13 }
 0x8a5   :  { %v563_v23 = vmul.f32 %v561_v14, %v1852_v50 }
 0x8a6   :  { %v539_v25 = vmul.f32 %v537_v16, %v1854_v52 }
 0x911   :  { %v566_v15 = vpop.permute.xlu1 %565 }
 0x912   :  { %v568_v18 = vmul.f32 %v566_v15, %v561_v14  ;;  %v542_v19 = vpop.permute.xlu0 %541 }
 0x913   :  { %v544_v20 = vmul.f32 %v542_v19, %v537_v16  ;;  %v816_v19 = vld [vmem:[#allocation2 + $0x28] sm:$0xff] }
 0x914   :  { %570 = vrot.lane.b32.xlu1 %v568_v18, %s1687_s8 }
 0x915   :  { %546 = vrot.lane.b32.xlu0 %v544_v20, %s1687_s8 }
 0x986   :  { %v571_v24 = vpop.permute.xlu1 %570 }
 0x987   :  { %v1880_v26 = vadd.f32 %v571_v24, %v563_v23  ;;  %v547_v29 = vpop.permute.xlu0 %546 }
 0x988   :  { %v1882_v30 = vadd.f32 %v547_v29, %v539_v25 }
 0x989   :  { %1535 = vtanh.f32 %v1880_v26 }
 0x98a   :  { %1537 = vtanh.f32 %v1882_v30 }
 0x993   :  { %v1536_v31 = vpop.eup %1535 }
 0x994   :  { %v1538_v32 = vpop.eup %1537  ;;  %576 = vrot.lane.b32.xlu1 %v1536_v31, %s1686_s7 }
 0x995   :  { %552 = vrot.lane.b32.xlu0 %v1538_v32, %s1686_s7 }
 0xa06   :  { %v577_v37 = vpop.permute.xlu1 %576 }
 0xa07   :  { %v579_v39 = vmul.f32 %v577_v37, %v561_v14  ;;  %v553_v40 = vpop.permute.xlu0 %552 }
 0xa08   :  { %v555_v41 = vmul.f32 %v553_v40, %v537_v16 }
 0xa09   :  { %581 = vrot.lane.b32.xlu0 %v579_v39, %s1687_s8 }
 0xa0a   :  { %585 = vrot.lane.b32.xlu1 %v555_v41, %s1686_s7 }
 0xa7b   :  { %v582_v42 = vpop.permute.xlu0 %581 }
 0xa7c   :  { %v586_v43 = vpop.permute.xlu1 %585 }
 0xa7d   :  { %v588_v44 = vsel %vm196_vm0, %v582_v42, %v586_v43 }
 0xa7e   :  { %1327 = vmatmul.mubr.msk.f32.vlgmr.msra.gmra.mrb[2].mxu1 %vm198_vm1, %v588_v44 }
 0xa7f   :  { %1433 = vmatpush1.bf16.msra.mxu1 %v1771_v21  ;;  %916 = vmatprep.mubr.f32.mxu1 %v1685_v0 }
 0xa80   :  { %1435 = vmatprep.subr.bf16.mxu1 %v1773_v22 }
 0xa83   :  { %1437 = vmatpush1.bf16.msra.mxu1 %v1778_v27 }
 0xa84   :  { %1439 = vmatprep.subr.bf16.mxu1 %v1782_v28 }
 0xa87   :  { %1441 = vmatpush1.bf16.msra.mxu1 %v1786_v33 }
 0xa88   :  { %1443 = vmatprep.subr.bf16.mxu1 %v1790_v34 }
 0xa8b   :  { %1445 = vmatpush1.bf16.msra.mxu1 %v1795_v38 }
 0xa8c   :  { %1463 = vmatprep.subr.bf16.mxu1 %v1769_v17 }
 0xb51   :  { %v658_v47 = vpop.f32.mrb[2].mxu1 }
 0xb52   :  { %v687_v48 = vadd.f32 %v686_v45, %v658_v47  ;;  %v660_v49 = vpop.f32.mrb[3].mxu1 }
 0xb53   :  { %v663_v50 = vadd.f32 %v1816_v46, %v660_v49 }
 0xb54   :  { %1539 = vtanh.f32 %v687_v48  ;;  %v688_v53 = vmul.f32 0.5, %v687_v48 }
 0xb55   :  { %1541 = vtanh.f32 %v663_v50  ;;  %v664_v54 = vmul.f32 0.5, %v663_v50 }
 0xb56   :  { %1543 = vtanh.f32 %v688_v53 }
 0xb57   :  { %1545 = vtanh.f32 %v664_v54  ;;  %v129_v54 = vld [vmem:[%s128_s1] sm:$0x1] }
 0xb58   :  { %130 = vst [vmem:[#allocation2 + $0x30] sm:$0x1] %v129_v54 }
 0xb5e   :  { %v1540_v51 = vpop.eup %1539 }
 0xb5f   :  { %v1542_v52 = vpop.eup %1541  ;;  %695 = vrot.lane.b32.xlu1 %v1540_v51, %s1686_s7 }
 0xb60   :  { %671 = vrot.lane.b32.xlu0 %v1542_v52, %s1686_s7  ;;  %v1544_v55 = vpop.eup %1543 }
 0xb61   :  { %v1546_v17 = vpop.eup %1545  ;;  %v690_v56 = vmul.f32 0.5, %v1544_v55  ;;  %v133_v55 = vld [vmem:[%s132_s29] sm:$0x1] }
 0xb62   :  { %v666_v57 = vmul.f32 0.5, %v1546_v17  ;;  %134 = vst [vmem:[#allocation2 + $0x31] sm:$0x1] %v133_v55 }
 0xb63   :  { %v691_v58 = vadd.f32 0.5, %v690_v56 }
 0xb64   :  { %v667_v60 = vadd.f32 0.5, %v666_v57 }
 0xb65   :  { %v693_v1 = vmul.f32 %v691_v58, %v1880_v26 }
 0xb66   :  { %v669_v3 = vmul.f32 %v667_v60, %v1882_v30 }
 0xbd1   :  { %v696_v59 = vpop.permute.xlu1 %695 }
 0xbd2   :  { %v698_v61 = vmul.f32 %v696_v59, %v691_v58  ;;  %v672_v62 = vpop.permute.xlu0 %671 }
 0xbd3   :  { %v674_v63 = vmul.f32 %v672_v62, %v667_v60  ;;  %v946_v62 = vld [vmem:[#allocation2 + $0x30] sm:$0xff] }
 0xbd4   :  { %700 = vrot.lane.b32.xlu1 %v698_v61, %s1687_s8 }
 0xbd5   :  { %676 = vrot.lane.b32.xlu0 %v674_v63, %s1687_s8 }
 0xc46   :  { %v701_v2 = vpop.permute.xlu1 %700 }
 0xc47   :  { %v703_v4 = vadd.f32 %v701_v2, %v693_v1  ;;  %v677_v5 = vpop.permute.xlu0 %676 }
 0xc48   :  { %v679_v6 = vadd.f32 %v677_v5, %v669_v3 }
 0xc49   :  { %1547 = vtanh.f32 %v703_v4 }
 0xc4a   :  { %1549 = vtanh.f32 %v679_v6 }
 0xc53   :  { %v1548_v7 = vpop.eup %1547 }
 0xc54   :  { %v1550_v8 = vpop.eup %1549  ;;  %706 = vrot.lane.b32.xlu1 %v1548_v7, %s1686_s7 }
 0xc55   :  { %682 = vrot.lane.b32.xlu0 %v1550_v8, %s1686_s7 }
 0xcc6   :  { %v707_v11 = vpop.permute.xlu1 %706 }
 0xcc7   :  { %v709_v12 = vmul.f32 %v707_v11, %v691_v58  ;;  %v683_v13 = vpop.permute.xlu0 %682 }
 0xcc8   :  { %v685_v14 = vmul.f32 %v683_v13, %v667_v60 }
 0xcc9   :  { %711 = vrot.lane.b32.xlu0 %v709_v12, %s1687_s8 }
 0xcca   :  { %715 = vrot.lane.b32.xlu1 %v685_v14, %s1686_s7 }
 0xd3b   :  { %v712_v15 = vpop.permute.xlu0 %711 }
 0xd3c   :  { %v716_v16 = vpop.permute.xlu1 %715 }
 0xd3d   :  { %v718_v18 = vsel %vm196_vm0, %v712_v15, %v716_v16 }
 0xd3e   :  { %1328 = vmatmul.mubr.msk.f32.vlgmr.msra.gmra.mrb[4].mxu0 %vm198_vm1, %v718_v18 }
 0xd3f   :  { %1449 = vmatpush1.bf16.msra.mxu0 %v1771_v21  ;;  %1046 = vmatprep.mubr.f32.mxu0 %v1685_v0 }
 0xd40   :  { %1451 = vmatprep.subr.bf16.mxu0 %v1773_v22 }
 0xd43   :  { %1453 = vmatpush1.bf16.msra.mxu0 %v1778_v27 }
 0xd44   :  { %1455 = vmatprep.subr.bf16.mxu0 %v1782_v28 }
 0xd47   :  { %1457 = vmatpush1.bf16.msra.mxu0 %v1786_v33 }
 0xd48   :  { %1459 = vmatprep.subr.bf16.mxu0 %v1790_v34 }
 0xd4b   :  { %1461 = vmatpush1.bf16.msra.mxu0 %v1795_v38 }
 0xe11   :  { %v788_v20 = vpop.f32.mrb[4].mxu0 }
 0xe12   :  { %v817_v23 = vadd.f32 %v816_v19, %v788_v20  ;;  %v790_v24 = vpop.f32.mrb[5].mxu0  ;;  %v137_v20 = vld [vmem:[%s136_s3] sm:$0x1] }
 0xe13   :  { %v793_v25 = vadd.f32 %v1816_v46, %v790_v24  ;;  %138 = vst [vmem:[#allocation2 + $0x38] sm:$0x1] %v137_v20 }
 0xe14   :  { %1551 = vtanh.f32 %v817_v23  ;;  %v818_v30 = vmul.f32 0.5, %v817_v23  ;;  %v141_v23 = vld [vmem:[%s140_s6] sm:$0x1] }
 0xe15   :  { %1553 = vtanh.f32 %v793_v25  ;;  %v794_v31 = vmul.f32 0.5, %v793_v25  ;;  %142 = vst [vmem:[#allocation2 + $0x39] sm:$0x1] %v141_v23 }
 0xe16   :  { %1555 = vtanh.f32 %v818_v30 }
 0xe17   :  { %1557 = vtanh.f32 %v794_v31 }
 0xe1e   :  { %v1552_v26 = vpop.eup %1551 }
 0xe1f   :  { %v1554_v29 = vpop.eup %1553  ;;  %825 = vrot.lane.b32.xlu1 %v1552_v26, %s1686_s7 }
 0xe20   :  { %801 = vrot.lane.b32.xlu0 %v1554_v29, %s1686_s7  ;;  %v1556_v32 = vpop.eup %1555 }
 0xe21   :  { %v1558_v35 = vpop.eup %1557  ;;  %v820_v36 = vmul.f32 0.5, %v1556_v32 }
 0xe22   :  { %v796_v37 = vmul.f32 0.5, %v1558_v35  ;;  %v1076_v35 = vld [vmem:[#allocation2 + $0x38] sm:$0xff] }
 0xe23   :  { %v821_v39 = vadd.f32 0.5, %v820_v36 }
 0xe24   :  { %v797_v41 = vadd.f32 0.5, %v796_v37 }
 0xe25   :  { %v823_v45 = vmul.f32 %v821_v39, %v703_v4 }
 0xe26   :  { %v799_v48 = vmul.f32 %v797_v41, %v679_v6 }
 0xe91   :  { %v826_v40 = vpop.permute.xlu1 %825 }
 0xe92   :  { %v828_v42 = vmul.f32 %v826_v40, %v821_v39  ;;  %v802_v43 = vpop.permute.xlu0 %801 }
 0xe93   :  { %v804_v44 = vmul.f32 %v802_v43, %v797_v41 }
 0xe94   :  { %830 = vrot.lane.b32.xlu1 %v828_v42, %s1687_s8 }
 0xe95   :  { %806 = vrot.lane.b32.xlu0 %v804_v44, %s1687_s8 }
 0xf06   :  { %v831_v47 = vpop.permute.xlu1 %830 }
 0xf07   :  { %v833_v49 = vadd.f32 %v831_v47, %v823_v45  ;;  %v807_v50 = vpop.permute.xlu0 %806 }
 0xf08   :  { %v809_v51 = vadd.f32 %v807_v50, %v799_v48 }
 0xf09   :  { %1559 = vtanh.f32 %v833_v49 }
 0xf0a   :  { %1561 = vtanh.f32 %v809_v51 }
 0xf13   :  { %v1560_v52 = vpop.eup %1559 }
 0xf14   :  { %v1562_v53 = vpop.eup %1561  ;;  %836 = vrot.lane.b32.xlu1 %v1560_v52, %s1686_s7 }
 0xf15   :  { %812 = vrot.lane.b32.xlu0 %v1562_v53, %s1686_s7 }
 0xf86   :  { %v837_v17 = vpop.permute.xlu1 %836 }
 0xf87   :  { %v839_v56 = vmul.f32 %v837_v17, %v821_v39  ;;  %v813_v57 = vpop.permute.xlu0 %812 }
 0xf88   :  { %v815_v58 = vmul.f32 %v813_v57, %v797_v41 }
 0xf89   :  { %841 = vrot.lane.b32.xlu0 %v839_v56, %s1687_s8 }
 0xf8a   :  { %845 = vrot.lane.b32.xlu1 %v815_v58, %s1686_s7 }
 0xffb   :  { %v842_v59 = vpop.permute.xlu0 %841 }
 0xffc   :  { %v846_v60 = vpop.permute.xlu1 %845 }
 0xffd   :  { %v848_v61 = vsel %vm196_vm0, %v842_v59, %v846_v60 }
 0xffe   :  { %1329 = vmatmul.mubr.msk.f32.vlgmr.msra.gmra.mrb[4].mxu1 %vm198_vm1, %v848_v61 }
 0xfff   :  { %1465 = vmatpush1.bf16.msra.mxu1 %v1771_v21  ;;  %1176 = vmatprep.mubr.f32.mxu1 %v1685_v0 }
0x1000   :  { %1467 = vmatprep.subr.bf16.mxu1 %v1773_v22 }
0x1003   :  { %1469 = vmatpush1.bf16.msra.mxu1 %v1778_v27 }
0x1004   :  { %1471 = vmatprep.subr.bf16.mxu1 %v1782_v28 }
0x1007   :  { %1473 = vmatpush1.bf16.msra.mxu1 %v1786_v33 }
0x1008   :  { %1475 = vmatprep.subr.bf16.mxu1 %v1790_v34 }
0x100b   :  { %1477 = vmatpush1.bf16.msra.mxu1 %v1795_v38 }
0x10d1   :  { %v918_v63 = vpop.f32.mrb[4].mxu1 }
0x10d2   :  { %v947_v1 = vadd.f32 %v946_v62, %v918_v63  ;;  %v920_v2 = vpop.f32.mrb[5].mxu1 }
0x10d3   :  { %v923_v21 = vadd.f32 %v1816_v46, %v920_v2 }
0x10d4   :  { %1563 = vtanh.f32 %v947_v1  ;;  %v948_v27 = vmul.f32 0.5, %v947_v1 }
0x10d5   :  { %1565 = vtanh.f32 %v923_v21  ;;  %v924_v28 = vmul.f32 0.5, %v923_v21 }
0x10d6   :  { %1567 = vtanh.f32 %v948_v27 }
0x10d7   :  { %1569 = vtanh.f32 %v924_v28 }
0x10de   :  { %v1564_v3 = vpop.eup %1563 }
0x10df   :  { %v1566_v22 = vpop.eup %1565  ;;  %955 = vrot.lane.b32.xlu1 %v1564_v3, %s1686_s7 }
0x10e0   :  { %931 = vrot.lane.b32.xlu0 %v1566_v22, %s1686_s7  ;;  %v1568_v33 = vpop.eup %1567 }
0x10e1   :  { %v1570_v34 = vpop.eup %1569  ;;  %v950_v38 = vmul.f32 0.5, %v1568_v33 }
0x10e2   :  { %v926_v4 = vmul.f32 0.5, %v1570_v34 }
0x10e3   :  { %v951_v5 = vadd.f32 0.5, %v950_v38 }
0x10e4   :  { %v927_v7 = vadd.f32 0.5, %v926_v4 }
0x10e5   :  { %v953_v11 = vmul.f32 %v951_v5, %v833_v49 }
0x10e6   :  { %v929_v13 = vmul.f32 %v927_v7, %v809_v51 }
0x1151   :  { %v956_v6 = vpop.permute.xlu1 %955 }
0x1152   :  { %v958_v8 = vmul.f32 %v956_v6, %v951_v5  ;;  %v932_v9 = vpop.permute.xlu0 %931 }
0x1153   :  { %v934_v10 = vmul.f32 %v932_v9, %v927_v7 }
0x1154   :  { %960 = vrot.lane.b32.xlu1 %v958_v8, %s1687_s8 }
0x1155   :  { %936 = vrot.lane.b32.xlu0 %v934_v10, %s1687_s8 }
0x11c6   :  { %v961_v12 = vpop.permute.xlu1 %960 }
0x11c7   :  { %v963_v14 = vadd.f32 %v961_v12, %v953_v11  ;;  %v937_v15 = vpop.permute.xlu0 %936 }
0x11c8   :  { %v939_v16 = vadd.f32 %v937_v15, %v929_v13  ;;  %v159_v13 = vld [vmem:[#allocation9] sm:$0xff]  ;;  %v1688_v15 = vmov 0.0|0.0  }
0x11c9   :  { %1571 = vtanh.f32 %v963_v14  ;;  %1478 = vmatprep.subr.bf16.mxu0 %v1688_v15 }
0x11ca   :  { %1573 = vtanh.f32 %v939_v16 }
0x11d3   :  { %v1572_v18 = vpop.eup %1571 }
0x11d4   :  { %v1574_v19 = vpop.eup %1573  ;;  %966 = vrot.lane.b32.xlu1 %v1572_v18, %s1686_s7  ;;  %v162_v18 = vld [vmem:[#allocation9 + $0x18] sm:$0xff] }
0x11d5   :  { %942 = vrot.lane.b32.xlu0 %v1574_v19, %s1686_s7 }
0x1246   :  { %v967_v24 = vpop.permute.xlu1 %966 }
0x1247   :  { %v969_v25 = vmul.f32 %v967_v24, %v951_v5  ;;  %v943_v26 = vpop.permute.xlu0 %942 }
0x1248   :  { %v945_v29 = vmul.f32 %v943_v26, %v927_v7  ;;  %v1332_v26 = vld [vmem:[#allocation9 + $0x20] ss:$0 sm:$0xff] }
0x1249   :  { %971 = vrot.lane.b32.xlu0 %v969_v25, %s1687_s8 }
0x124a   :  { %975 = vrot.lane.b32.xlu1 %v945_v29, %s1686_s7 }
0x12bb   :  { %v972_v30 = vpop.permute.xlu0 %971 }
0x12bc   :  { %v976_v31 = vpop.permute.xlu1 %975 }
0x12bd   :  { %v978_v32 = vsel %vm196_vm0, %v972_v30, %v976_v31 }
0x12be   :  { %1330 = vmatmul.mubr.msk.f32.vlgmr.msra.gmra.mrb[6].mxu0 %vm198_vm1, %v978_v32 }
0x12bf   :  { %1347 = vmatprep.mubr.msk.f32.mxu0 %vm1689_vm2, %v1685_v0 }
0x1391   :  { %v1048_v36 = vpop.f32.mrb[6].mxu0 }
0x1392   :  { %v1077_v37 = vadd.f32 %v1076_v35, %v1048_v36  ;;  %v1050_v39 = vpop.f32.mrb[7].mxu0 }
0x1393   :  { %v1053_v40 = vadd.f32 %v1816_v46, %v1050_v39 }
0x1394   :  { %1575 = vtanh.f32 %v1077_v37  ;;  %v1078_v43 = vmul.f32 0.5, %v1077_v37 }
0x1395   :  { %1577 = vtanh.f32 %v1053_v40  ;;  %v1054_v44 = vmul.f32 0.5, %v1053_v40 }
0x1396   :  { %1579 = vtanh.f32 %v1078_v43 }
0x1397   :  { %1581 = vtanh.f32 %v1054_v44 }
0x139e   :  { %v1576_v41 = vpop.eup %1575 }
0x139f   :  { %v1578_v42 = vpop.eup %1577  ;;  %1085 = vrot.lane.b32.xlu1 %v1576_v41, %s1686_s7 }
0x13a0   :  { %1061 = vrot.lane.b32.xlu0 %v1578_v42, %s1686_s7  ;;  %v1580_v45 = vpop.eup %1579 }
0x13a1   :  { %v1582_v47 = vpop.eup %1581  ;;  %v1080_v48 = vmul.f32 0.5, %v1580_v45 }
0x13a2   :  { %v1056_v49 = vmul.f32 0.5, %v1582_v47 }
0x13a3   :  { %v1081_v50 = vadd.f32 0.5, %v1080_v48 }
0x13a4   :  { %v1057_v52 = vadd.f32 0.5, %v1056_v49 }
0x13a5   :  { %v1083_v17 = vmul.f32 %v1081_v50, %v963_v14  ;;  %v160_v14 = vld [vmem:[#allocation9 + $0x8] sm:$0xff] }
0x13a6   :  { %v1059_v57 = vmul.f32 %v1057_v52, %v939_v16  ;;  %v1479_v16 = vpack.c.bf16 %v160_v14, %v159_v13 }
0x13a8   :  { %1480 = vmatpush3.bf16.msra.mxu0 %v1479_v16 }
0x13a9   :  { %1481 = vmatprep.subr.bf16.mxu0 %v1688_v15 }
0x1411   :  { %v1086_v51 = vpop.permute.xlu1 %1085 }
0x1412   :  { %v1088_v53 = vmul.f32 %v1086_v51, %v1081_v50  ;;  %v1062_v54 = vpop.permute.xlu0 %1061 }
0x1413   :  { %v1064_v55 = vmul.f32 %v1062_v54, %v1057_v52 }
0x1414   :  { %1090 = vrot.lane.b32.xlu1 %v1088_v53, %s1687_s8 }
0x1415   :  { %1066 = vrot.lane.b32.xlu0 %v1064_v55, %s1687_s8 }
0x1486   :  { %v1091_v56 = vpop.permute.xlu1 %1090 }
0x1487   :  { %v1093_v58 = vadd.f32 %v1091_v56, %v1083_v17  ;;  %v1067_v59 = vpop.permute.xlu0 %1066 }
0x1488   :  { %v1069_v60 = vadd.f32 %v1067_v59, %v1059_v57 }
0x1489   :  { %1583 = vtanh.f32 %v1093_v58 }
0x148a   :  { %1585 = vtanh.f32 %v1069_v60 }
0x1493   :  { %v1584_v61 = vpop.eup %1583 }
0x1494   :  { %v1586_v62 = vpop.eup %1585  ;;  %1096 = vrot.lane.b32.xlu1 %v1584_v61, %s1686_s7 }
0x1495   :  { %1072 = vrot.lane.b32.xlu0 %v1586_v62, %s1686_s7 }
0x1506   :  { %v1097_v63 = vpop.permute.xlu1 %1096 }
0x1507   :  { %v1099_v1 = vmul.f32 %v1097_v63, %v1081_v50  ;;  %v1073_v2 = vpop.permute.xlu0 %1072 }
0x1508   :  { %v1075_v21 = vmul.f32 %v1073_v2, %v1057_v52 }
0x1509   :  { %1101 = vrot.lane.b32.xlu0 %v1099_v1, %s1687_s8 }
0x150a   :  { %1105 = vrot.lane.b32.xlu1 %v1075_v21, %s1686_s7 }
0x157b   :  { %v1102_v3 = vpop.permute.xlu0 %1101 }
0x157c   :  { %v1106_v22 = vpop.permute.xlu1 %1105 }
0x157d   :  { %v1108_v27 = vsel %vm196_vm0, %v1102_v3, %v1106_v22 }
0x157e   :  { %1331 = vmatmul.mubr.msk.f32.vlgmr.msra.gmra.mrb[6].mxu1 %vm198_vm1, %v1108_v27 }
0x1651   :  { %v1178_v28 = vpop.f32.mrb[6].mxu1 }
0x1652   :  { %v1179_v33 = vpop.f32.mrb[7].mxu1 }
0x1653   :  { %v1182_v34 = vadd.f32 %v1816_v46, %v1179_v33  ;;  %v161_v46 = vld [vmem:[#allocation9 + $0x10] sm:$0xff] }
0x1654   :  { %v1482_v19 = vpack.c.bf16 %v162_v18, %v161_v46 }
0x1655   :  { %1587 = vtanh.f32 %v1182_v34  ;;  %v1183_v4 = vmul.f32 0.5, %v1182_v34 }
0x1656   :  { %1483 = vmatpush3.bf16.msra.mxu0 %v1482_v19 }
0x1657   :  { %1589 = vtanh.f32 %v1183_v4 }
0x165f   :  { %v1588_v38 = vpop.eup %1587 }
0x1660   :  { %1190 = vrot.lane.b32.xlu0 %v1588_v38, %s1686_s7 }
0x1661   :  { %v1590_v5 = vpop.eup %1589 }
0x1662   :  { %v1185_v6 = vmul.f32 0.5, %v1590_v5 }
0x1664   :  { %v1186_v7 = vadd.f32 0.5, %v1185_v6 }
0x1666   :  { %v1188_v10 = vmul.f32 %v1186_v7, %v1069_v60 }
0x16d2   :  { %v1191_v8 = vpop.permute.xlu0 %1190 }
0x16d3   :  { %v1193_v9 = vmul.f32 %v1191_v8, %v1186_v7 }
0x16d5   :  { %1195 = vrot.lane.b32.xlu1 %v1193_v9, %s1687_s8 }
0x1747   :  { %v1196_v11 = vpop.permute.xlu1 %1195 }
0x1748   :  { %v1198_v12 = vadd.f32 %v1196_v11, %v1188_v10 }
0x174a   :  { %1591 = vtanh.f32 %v1198_v12 }
0x1754   :  { %v1592_v20 = vpop.eup %1591 }
0x1755   :  { %1201 = vrot.lane.b32.xlu0 %v1592_v20, %s1686_s7 }
0x17c7   :  { %v1202_v23 = vpop.permute.xlu0 %1201 }
0x17c8   :  { %v1204_v24 = vmul.f32 %v1202_v23, %v1186_v7 }
0x17ca   :  { %1210 = vrot.lane.b32.xlu1 %v1204_v24, %s1687_s8 }
0x183c   :  { %v1211_v25 = vpop.permute.xlu1 %1210 }
0x183d   :  { %1348 = vmatmul.mubr.msk.f32.vlgmr.msra.gmra.mrb[8].mxu0 %vm196_vm0, %v1211_v25 }
0x1910   :  { %v1280_v29 = vpop.f32.mrb[8].mxu0 }
0x1911   :  { %v1281_v30 = vadd.f32 %v1332_v26, %v1280_v29  ;;  %v1349_v31 = vpop.f32.mrb[9].mxu0 }
0x1913   :  { %1284 = vst [vmem:[%s1977_s4] sm:$0xff] %v1281_v30 }
0x1914   :  { %1289 = vsyncpa [#allocation4], 1 }
0x1915   :  { %1290 = vsyncpa [#allocation8], 1 }
0x1916   :  { %1291 = vsyncpa [#allocation5], 1 }

</bundles_post_ra>
